<compile_context>
chip_gen: v7x
topology: tpu7x:2x2x1
jax: 0.10.0
libtpu: 0.0.40
codegen_flags: <defaults>
</compile_context>

<pallas_src>
import functools
import math

import jax
import jax.numpy as jnp
from jax import lax
from jax.experimental import pallas as pl
from jax.experimental.pallas import tpu as pltpu

LN_EPS = 1e-12
K_PAD = 128      # lane-dense emissions width


def _layer_norm(x, g, b):
    mu = jnp.mean(x, axis=-1, keepdims=True)
    var = jnp.mean(jnp.square(x - mu), axis=-1, keepdims=True)
    return (x - mu) * lax.rsqrt(var + LN_EPS) * g + b


# --------------------------------------------------------------------------
# Fused encoder: emb LayerNorm -> L BERT layers -> classifier.
# grid = (num_core_chunks, L); per-layer weights stacked [L, ...] and selected
# via index_map; activation (Bc*S, H) resident in VMEM scratch.
# --------------------------------------------------------------------------
def _fused_encoder_kernel(xemb_ref, bias_ref, embg_ref, embb_ref,
                          wqkv_ref, bqkv_ref, wo_ref, bo_ref,
                          ln1g_ref, ln1b_ref,
                          w1_ref, b1_ref, w2_ref, b2_ref,
                          ln2g_ref, ln2b_ref,
                          clsw_ref, clsb_ref,
                          em_ref, x_scr, *, num_heads):
    l = pl.program_id(1)
    n_layers = pl.num_programs(1)

    Bc, S, H = xemb_ref.shape
    hd = H // num_heads
    scale = 1.0 / math.sqrt(hd)

    # Layer 0: initialize the VMEM-resident activation (Bc*S, H) from the
    # pre-computed embedding sum with the embedding LayerNorm.
    @pl.when(l == 0)
    def _():
        xemb = jnp.concatenate([xemb_ref[b] for b in range(Bc)], axis=0)  # (Bc*S, H)
        x_scr[...] = _layer_norm(xemb, embg_ref[...], embb_ref[...])

    x = x_scr[...]                                   # (Bc*S, H) f32
    xb = x.astype(jnp.bfloat16)

    # ---- self-attention (fused QKV matmul, heads+batch batched in one einsum)
    qkv = jnp.dot(xb, wqkv_ref[0],
                  preferred_element_type=jnp.float32) + bqkv_ref[0]       # (Bc*S, 3H)
    q = qkv[:, :H]
    k = qkv[:, H:2 * H]
    v = qkv[:, 2 * H:]

    def split_heads(t):  # (Bc*S, H) -> (num_heads*Bc, S, hd), g = h*Bc + b
        return jnp.stack([t[b * S:(b + 1) * S, h * hd:(h + 1) * hd]
                          for h in range(num_heads) for b in range(Bc)], axis=0)

    qh = split_heads(q)
    kh = split_heads(k)
    vh = split_heads(v)

    bias = bias_ref[...]                                   # (Bc, 1, S)
    bias_g = jnp.concatenate([bias] * num_heads, axis=0)   # (num_heads*Bc, 1, S)

    s = jnp.einsum('gqd,gkd->gqk',
                   qh.astype(jnp.bfloat16), kh.astype(jnp.bfloat16),
                   preferred_element_type=jnp.float32) * scale            # (G, S, S)
    s = s + bias_g
    s = s - jnp.max(s, axis=-1, keepdims=True)
    p = jnp.exp(s)
    p = p * pl.reciprocal(jnp.sum(p, axis=-1, keepdims=True), approx=True)
    ctx = jnp.einsum('gqk,gkd->gqd',
                     p.astype(jnp.bfloat16), vh.astype(jnp.bfloat16),
                     preferred_element_type=jnp.float32)                  # (G, S, hd)

    ctx2 = jnp.concatenate(
        [jnp.concatenate([ctx[h * Bc + b] for h in range(num_heads)], axis=-1)
         for b in range(Bc)], axis=0)                                     # (Bc*S, H)

    attn_out = jnp.dot(ctx2.astype(jnp.bfloat16), wo_ref[0],
                       preferred_element_type=jnp.float32) + bo_ref[0]
    x1 = _layer_norm(x + attn_out, ln1g_ref[0], ln1b_ref[0])

    # ---- FFN
    h1 = jnp.dot(x1.astype(jnp.bfloat16), w1_ref[0],
                 preferred_element_type=jnp.float32) + b1_ref[0]
    h1 = jax.nn.gelu(h1, approximate=True)   # TODO(synk): exact erf-GELU
    h2 = jnp.dot(h1.astype(jnp.bfloat16), w2_ref[0],
                 preferred_element_type=jnp.float32) + b2_ref[0]
    x2 = _layer_norm(x1 + h2, ln2g_ref[0], ln2b_ref[0])
    x_scr[...] = x2

    # ---- classifier fused into the last layer iteration (lane-dense K_PAD out)
    @pl.when(l == n_layers - 1)
    def _():
        em = jnp.dot(x2.astype(jnp.bfloat16), clsw_ref[...],
                     preferred_element_type=jnp.float32) + clsb_ref[...]  # (Bc*S, K_PAD)
        for b in range(Bc):
            em_ref[b] = em[b * S:(b + 1) * S, :]


def fused_encoder(x_emb, attn_bias, params, num_heads, num_core_chunks=1):
    B, S, H = x_emb.shape
    L = params['wqkv'].shape[0]
    Kp = params['cls_w'].shape[1]
    assert B % num_core_chunks == 0
    Bc = B // num_core_chunks

    stacked = [params['wqkv'], params['bqkv'], params['wo'], params['bo'],
               params['ln1_g'], params['ln1_b'], params['w1'], params['b1'],
               params['w2'], params['b2'], params['ln2_g'], params['ln2_b']]

    def lspec(a):   # per-layer stacked param: slab l selected via index_map
        zeros = (0,) * (a.ndim - 1)
        return pl.BlockSpec((1,) + a.shape[1:], lambda c, l, z=zeros: (l,) + z)

    def sspec(a):   # shared param: constant block
        zeros = (0,) * a.ndim
        return pl.BlockSpec(a.shape, lambda c, l, z=zeros: z)

    in_specs = ([pl.BlockSpec((Bc, S, H), lambda c, l: (c, 0, 0)),
                 pl.BlockSpec((Bc, 1, S), lambda c, l: (c, 0, 0)),
                 sspec(params['emb_ln_g']), sspec(params['emb_ln_b'])]
                + [lspec(a) for a in stacked]
                + [sspec(params['cls_w']), sspec(params['cls_b'])])

    return pl.pallas_call(
        functools.partial(_fused_encoder_kernel, num_heads=num_heads),
        out_shape=jax.ShapeDtypeStruct((B, S, Kp), jnp.float32),
        grid=(num_core_chunks, L),
        in_specs=in_specs,
        out_specs=pl.BlockSpec((Bc, S, Kp), lambda c, l: (c, 0, 0)),
        scratch_shapes=[pltpu.VMEM((Bc * S, H), jnp.float32)],
        compiler_params=pltpu.CompilerParams(
            dimension_semantics=("parallel", "arbitrary"),
            vmem_limit_bytes=48 * 1024 * 1024),
    )(x_emb, attn_bias, params['emb_ln_g'], params['emb_ln_b'],
      *stacked, params['cls_w'], params['cls_b'])


# --------------------------------------------------------------------------
# CRF: log-likelihood (reduction='mean') + Viterbi decode, single kernel.
# The emissions[:, 1:-1]/[:, :K], mask[:, 2:] and tags[:, 1:-1] slices are done
# in-kernel.  Forward + Viterbi recursions run in one pl.loop with VMEM scratch
# state; backpointers land in a (T, B, K) VMEM buffer.  Gold-path numerator is
# pure VPU (no MXU pushes).
# --------------------------------------------------------------------------
def _crf_kernel(em_ref, mask_ref, tags_ref, start_ref, end_ref, trans_ref,
                loss_ref, dec_ref, score_scr, vscore_scr, hist_scr, *, num_tags):
    K = num_tags
    B, S, _ = em_ref.shape
    T = S - 2

    em = em_ref[...][:, 1:S - 1, :K]                     # (B, T, K) f32
    mask_sl = mask_ref[...][:, 2:].astype(jnp.float32)   # (B, T)
    tags_sl = tags_ref[...][:, 1:S - 1]                  # (B, T) i32
    start = start_ref[...]                               # (1, K)
    end = end_ref[...]                                   # (1, K)
    trans = trans_ref[...]                               # (K, K)

    iota_k = lax.broadcasted_iota(jnp.int32, (B, K), 1)
    iota_t = lax.broadcasted_iota(jnp.int32, (B, T), 1)
    idxs3 = lax.broadcasted_iota(jnp.int32, (B, K, K), 1)

    # ---- numerator (gold path score): fully vectorized, VPU-only.
    oh = (lax.broadcasted_iota(jnp.int32, (B, T, K), 2)
          == tags_sl[:, :, None]).astype(jnp.float32)            # (B, T, K)
    em_sel = jnp.sum(em * oh, axis=-1)                            # (B, T)
    inner = jnp.sum(trans[None, None] * oh[:, 1:, None, :], axis=3)   # (B, T-1, K)
    trans_sel = jnp.sum(inner * oh[:, :-1, :], axis=2)            # (B, T-1)
    num = (jnp.sum(start * oh[:, 0, :], axis=-1, keepdims=True)
           + em_sel[:, 0:1]
           + jnp.sum(mask_sl[:, 1:] * (em_sel[:, 1:] + trans_sel),
                     axis=-1, keepdims=True))                      # (B, 1)
    seq_end = jnp.sum(mask_sl, axis=-1, keepdims=True).astype(jnp.int32) - 1   # (B, 1)
    is_last = (iota_t == seq_end).astype(jnp.float32)              # (B, T)
    oh_last = jnp.sum(oh * is_last[:, :, None], axis=1)            # (B, K)
    num = num + jnp.sum(end * oh_last, axis=-1, keepdims=True)     # (B, 1)

    # ---- forward algorithm (log-partition) + Viterbi, shared te broadcast.
    score0 = start + em[:, 0, :]                                   # (B, K)
    score_scr[...] = score0
    vscore_scr[...] = score0

    @pl.loop(1, T)
    def _(i):
        # per-step emission / mask via broadcast-select (em, mask_sl closed over)
        sel = (iota_t == i).astype(jnp.float32)                    # (B, T)
        em_i = jnp.sum(em * sel[:, :, None], axis=1)               # (B, K)
        m_i = jnp.sum(mask_sl * sel, axis=1, keepdims=True)        # (B, 1)
        te = trans[None, :, :] + em_i[:, None, :]                  # (B, K, K)

        score = score_scr[...]
        bc_f = score[:, :, None] + te
        mx_f = jnp.max(bc_f, axis=1)
        nxt = mx_f + jnp.log(jnp.sum(jnp.exp(bc_f - mx_f[:, None, :]), axis=1))
        score_scr[...] = jnp.where(m_i > 0, nxt, score)

        vscore = vscore_scr[...]
        bc_v = vscore[:, :, None] + te
        mx_v = jnp.max(bc_v, axis=1, keepdims=True)
        hist_scr[i] = jnp.min(jnp.where(bc_v == mx_v, idxs3, K), axis=1)   # (B, K)
        vscore_scr[...] = jnp.where(m_i > 0, jnp.max(bc_v, axis=1), vscore)

    fsc = score_scr[...] + end
    mfs = jnp.max(fsc, axis=-1, keepdims=True)
    den = mfs + jnp.log(jnp.sum(jnp.exp(fsc - mfs), axis=-1, keepdims=True))
    llh = num - den                                                # (B, 1)
    loss_ref[...] = jnp.mean(llh, axis=0, keepdims=True)           # reduction='mean'

    # ---- Viterbi backtrace (T is small & static here; statically unrolled).
    vfin = vscore_scr[...] + end
    mxl = jnp.max(vfin, axis=-1, keepdims=True)
    best_last = jnp.min(jnp.where(vfin == mxl, iota_k, K),
                        axis=-1, keepdims=True)                    # (B, 1) i32
    cols = [None] * T
    cur = best_last                                                # tag at position i+1
    for i in range(T - 1, -1, -1):
        if i < T - 1:
            hist_i1 = hist_scr[i + 1]                              # (B, K) i32
            from_hist = jnp.sum(jnp.where(iota_k == cur, hist_i1, 0),
                                axis=-1, keepdims=True)            # (B, 1)
        else:
            from_hist = jnp.zeros((B, 1), jnp.int32)
        tag_i = jnp.where(i == seq_end, best_last,
                          jnp.where(i < seq_end, from_hist, -1))
        cols[i] = tag_i
        cur = jnp.where(tag_i >= 0, tag_i, cur)
    dec_ref[...] = jnp.concatenate(cols, axis=1)                   # (B, T), -1 past end


def crf_forward_decode(emissions_pad, attention_mask, tags, start, end, trans):
    B, S, _ = emissions_pad.shape
    K = trans.shape[0]
    T = S - 2
    vmem = pl.BlockSpec(memory_space=pltpu.MemorySpace.VMEM)
    loss, dec = pl.pallas_call(
        functools.partial(_crf_kernel, num_tags=K),
        out_shape=(jax.ShapeDtypeStruct((1, 1), jnp.float32),
                   jax.ShapeDtypeStruct((B, T), jnp.int32)),
        in_specs=[vmem] * 6,
        out_specs=(vmem, vmem),
        scratch_shapes=[pltpu.VMEM((B, K), jnp.float32),        # forward log-alpha
                        pltpu.VMEM((B, K), jnp.float32),        # Viterbi score
                        pltpu.VMEM((T, B, K), jnp.int32)],      # backpointers
    )(emissions_pad, attention_mask, tags, start, end, trans)
    return loss[0, 0], dec


# --------------------------------------------------------------------------
# Parameters (deterministic synthetic init; per-layer weights stacked [L, ...],
# big matmul weights stored bf16, classifier lane-padded to K_PAD).
# --------------------------------------------------------------------------
def init_params(key, vocab, H, L, inter, max_pos, K):
    keys = jax.random.split(key, 8 + L)

    def normal(k, shape):
        return jax.random.normal(k, shape, jnp.float32) * 0.02

    wqkv, bqkv, wo, bo, ln1g, ln1b = [], [], [], [], [], []
    w1, b1, w2, b2, ln2g, ln2b = [], [], [], [], [], []
    for l in range(L):
        lk = jax.random.split(keys[8 + l], 6)
        wq = normal(lk[0], (H, H))
        wk = normal(lk[1], (H, H))
        wv = normal(lk[2], (H, H))
        wqkv.append(jnp.concatenate([wq, wk, wv], axis=1).astype(jnp.bfloat16))
        bqkv.append(jnp.zeros((1, 3 * H), jnp.float32))
        wo.append(normal(lk[3], (H, H)).astype(jnp.bfloat16))
        bo.append(jnp.zeros((1, H), jnp.float32))
        ln1g.append(jnp.ones((1, H), jnp.float32))
        ln1b.append(jnp.zeros((1, H), jnp.float32))
        w1.append(normal(lk[4], (H, inter)).astype(jnp.bfloat16))
        b1.append(jnp.zeros((1, inter), jnp.float32))
        w2.append(normal(lk[5], (inter, H)).astype(jnp.bfloat16))
        b2.append(jnp.zeros((1, H), jnp.float32))
        ln2g.append(jnp.ones((1, H), jnp.float32))
        ln2b.append(jnp.zeros((1, H), jnp.float32))

    cls_w = jnp.zeros((H, K_PAD), jnp.float32).at[:, :K].set(normal(keys[3], (H, K)))

    params = {
        'word_emb': normal(keys[0], (vocab, H)),
        'pos_emb': normal(keys[1], (max_pos, H)),
        'type_emb': normal(keys[2], (2, H)),
        'emb_ln_g': jnp.ones((1, H), jnp.float32),
        'emb_ln_b': jnp.zeros((1, H), jnp.float32),
        'cls_w': cls_w.astype(jnp.bfloat16),              # lane-padded to K_PAD
        'cls_b': jnp.zeros((1, K_PAD), jnp.float32),
        'crf_start': jax.random.uniform(keys[4], (1, K), jnp.float32, -0.1, 0.1),
        'crf_end': jax.random.uniform(keys[5], (1, K), jnp.float32, -0.1, 0.1),
        'crf_trans': jax.random.uniform(keys[6], (K, K), jnp.float32, -0.1, 0.1),
        'wqkv': jnp.stack(wqkv), 'bqkv': jnp.stack(bqkv),
        'wo': jnp.stack(wo), 'bo': jnp.stack(bo),
        'ln1_g': jnp.stack(ln1g), 'ln1_b': jnp.stack(ln1b),
        'w1': jnp.stack(w1), 'b1': jnp.stack(b1),
        'w2': jnp.stack(w2), 'b2': jnp.stack(b2),
        'ln2_g': jnp.stack(ln2g), 'ln2_b': jnp.stack(ln2b),
    }
    return params


# --------------------------------------------------------------------------
# BertCRF.forward equivalent
# --------------------------------------------------------------------------
def bert_crf_forward(params, input_ids, attention_mask, token_type_ids, tags,
                     num_heads):
    B, S = input_ids.shape
    # Embedding lookups (gathers) done in host JAX.
    emb = (params['word_emb'][input_ids]
           + params['pos_emb'][:S][None, :, :]
           + params['type_emb'][token_type_ids]).astype(jnp.float32)
    attn_bias = ((1.0 - attention_mask.astype(jnp.float32)) * -10000.0)[:, None, :]

    # num_core_chunks=1: best weight reuse / MXU fill on v5e/v6e.
    # On v7x set num_core_chunks=2 to spread the batch across both TensorCores.
    emissions_pad = fused_encoder(emb, attn_bias, params, num_heads,
                                  num_core_chunks=1)               # (B, S, K_PAD)

    # seq / tag-lane slicing happens inside the CRF kernel.
    loss, tag_seq = crf_forward_decode(emissions_pad,
                                       attention_mask.astype(jnp.int32),
                                       tags.astype(jnp.int32),
                                       params['crf_start'], params['crf_end'],
                                       params['crf_trans'])
    # matches `return [loss, tag_list]` (decode=True); tag_seq padded with -1.
    # NOTE: loss is the CRF log-likelihood (module returns crf(...) un-negated).
    return loss, tag_seq


if __name__ == "__main__":
    B, S, H = 2, 8, 32
    L, NUM_HEADS, INTER = 2, 4, 64
    VOCAB, MAX_POS, NUM_TAGS = 64, 16, 5

    key = jax.random.PRNGKey(0)
    pkey, ikey, tkey = jax.random.split(key, 3)

    params = init_params(pkey, VOCAB, H, L, INTER, MAX_POS, NUM_TAGS)

    input_ids = jax.random.randint(ikey, (B, S), 0, VOCAB, jnp.int32)
    token_type_ids = jnp.zeros((B, S), jnp.int32)
    attention_mask = jnp.array([[1] * 8, [1] * 6 + [0] * 2], jnp.int32)
    tags = jax.random.randint(tkey, (B, S), 0, NUM_TAGS, jnp.int32)

    loss, tag_seq = bert_crf_forward(params, input_ids, attention_mask,
                                     token_type_ids, tags, NUM_HEADS)
    jax.block_until_ready((loss, tag_seq))
    print("KERNEL_OK")
</pallas_src>

<mosaic_0001>
module attributes {stable_mosaic.version = 11 : i64} {
  func.func @_fused_encoder_kernel(%arg0: i32, %arg1: i32, %arg2: memref<2x8x32xf32, #tpu.memory_space<vmem>>, %arg3: memref<2x1x8xf32, #tpu.memory_space<vmem>>, %arg4: memref<1x32xf32, #tpu.memory_space<vmem>>, %arg5: memref<1x32xf32, #tpu.memory_space<vmem>>, %arg6: memref<1x32x96xbf16, #tpu.memory_space<vmem>>, %arg7: memref<1x1x96xf32, #tpu.memory_space<vmem>>, %arg8: memref<1x32x32xbf16, #tpu.memory_space<vmem>>, %arg9: memref<1x1x32xf32, #tpu.memory_space<vmem>>, %arg10: memref<1x1x32xf32, #tpu.memory_space<vmem>>, %arg11: memref<1x1x32xf32, #tpu.memory_space<vmem>>, %arg12: memref<1x32x64xbf16, #tpu.memory_space<vmem>>, %arg13: memref<1x1x64xf32, #tpu.memory_space<vmem>>, %arg14: memref<1x64x32xbf16, #tpu.memory_space<vmem>>, %arg15: memref<1x1x32xf32, #tpu.memory_space<vmem>>, %arg16: memref<1x1x32xf32, #tpu.memory_space<vmem>>, %arg17: memref<1x1x32xf32, #tpu.memory_space<vmem>>, %arg18: memref<32x128xbf16, #tpu.memory_space<vmem>>, %arg19: memref<1x128xf32, #tpu.memory_space<vmem>>, %arg20: memref<2x8x128xf32, #tpu.memory_space<vmem>>, %arg21: memref<16x32xf32, #tpu.memory_space<vmem>>) attributes {dimension_semantics = [#tpu.dimension_semantics<parallel>, #tpu.dimension_semantics<arbitrary>], iteration_bounds = array<i64: 1, 2>, scalar_prefetch = 0 : i64, scratch_operands = 1 : i64, tpu.core_type = #tpu.core_type<tc>, window_params = [{transform_indices = @transform_0, window_bounds = array<i64: 2, 8, 32>}, {transform_indices = @transform_1, window_bounds = array<i64: 2, 1, 8>}, {pipeline_mode = #tpu.pipeline_mode<synchronous>, transform_indices = @transform_2, window_bounds = array<i64: 1, 32>}, {pipeline_mode = #tpu.pipeline_mode<synchronous>, transform_indices = @transform_3, window_bounds = array<i64: 1, 32>}, {transform_indices = @transform_4, window_bounds = array<i64: 1, 32, 96>}, {transform_indices = @transform_5, window_bounds = array<i64: 1, 1, 96>}, {transform_indices = @transform_6, window_bounds = array<i64: 1, 32, 32>}, {transform_indices = @transform_7, window_bounds = array<i64: 1, 1, 32>}, {transform_indices = @transform_8, window_bounds = array<i64: 1, 1, 32>}, {transform_indices = @transform_9, window_bounds = array<i64: 1, 1, 32>}, {transform_indices = @transform_10, window_bounds = array<i64: 1, 32, 64>}, {transform_indices = @transform_11, window_bounds = array<i64: 1, 1, 64>}, {transform_indices = @transform_12, window_bounds = array<i64: 1, 64, 32>}, {transform_indices = @transform_13, window_bounds = array<i64: 1, 1, 32>}, {transform_indices = @transform_14, window_bounds = array<i64: 1, 1, 32>}, {transform_indices = @transform_15, window_bounds = array<i64: 1, 1, 32>}, {pipeline_mode = #tpu.pipeline_mode<synchronous>, transform_indices = @transform_16, window_bounds = array<i64: 32, 128>}, {pipeline_mode = #tpu.pipeline_mode<synchronous>, transform_indices = @transform_17, window_bounds = array<i64: 1, 128>}, {transform_indices = @transform_18, window_bounds = array<i64: 2, 8, 128>}]} {
    %c0_i32 = arith.constant 0 : i32
    %0 = arith.cmpi eq, %arg1, %c0_i32 : i32
    %1 = arith.extui %0 : i1 to i32
    %c0_i32_0 = arith.constant 0 : i32
    %2 = arith.cmpi ne, %1, %c0_i32_0 : i32
    scf.if %2 {
      %c0_66 = arith.constant 0 : index
      %c0_67 = arith.constant 0 : index
      %c0_68 = arith.constant 0 : index
      %202 = vector.load %arg2[%c0_66, %c0_67, %c0_68] : memref<2x8x32xf32, #tpu.memory_space<vmem>>, vector<1x8x32xf32>
      %203 = vector.shape_cast %202 : vector<1x8x32xf32> to vector<8x32xf32>
      %c1 = arith.constant 1 : index
      %c0_69 = arith.constant 0 : index
      %c0_70 = arith.constant 0 : index
      %204 = vector.load %arg2[%c1, %c0_69, %c0_70] : memref<2x8x32xf32, #tpu.memory_space<vmem>>, vector<1x8x32xf32>
      %205 = vector.shape_cast %204 : vector<1x8x32xf32> to vector<8x32xf32>
      %206 = tpu.concatenate %203, %205 in 0 : vector<8x32xf32>, vector<8x32xf32> -> vector<16x32xf32>
      %c0_71 = arith.constant 0 : index
      %c0_72 = arith.constant 0 : index
      %207 = vector.load %arg4[%c0_71, %c0_72] : memref<1x32xf32, #tpu.memory_space<vmem>>, vector<1x32xf32>
      %c0_73 = arith.constant 0 : index
      %c0_74 = arith.constant 0 : index
      %208 = vector.load %arg5[%c0_73, %c0_74] : memref<1x32xf32, #tpu.memory_space<vmem>>, vector<1x32xf32>
      %cst_75 = arith.constant dense<0.000000e+00> : vector<16xf32>
      %209 = vector.multi_reduction <add>, %206, %cst_75 [1] : vector<16x32xf32> to vector<16xf32>
      %210 = vector.shape_cast %209 : vector<16xf32> to vector<16x1xf32>
      %cst_76 = arith.constant 3.200000e+01 : f32
      %211 = vector.broadcast %cst_76 : f32 to vector<16x1xf32>
      %212 = arith.divf %210, %211 : vector<16x1xf32>
      %213 = vector.broadcast %212 : vector<16x1xf32> to vector<16x32xf32>
      %214 = arith.subf %206, %213 : vector<16x32xf32>
      %215 = arith.mulf %214, %214 : vector<16x32xf32>
      %cst_77 = arith.constant dense<0.000000e+00> : vector<16xf32>
      %216 = vector.multi_reduction <add>, %215, %cst_77 [1] : vector<16x32xf32> to vector<16xf32>
      %217 = vector.shape_cast %216 : vector<16xf32> to vector<16x1xf32>
      %cst_78 = arith.constant 3.200000e+01 : f32
      %218 = vector.broadcast %cst_78 : f32 to vector<16x1xf32>
      %219 = arith.divf %217, %218 : vector<16x1xf32>
      %220 = vector.broadcast %212 : vector<16x1xf32> to vector<16x32xf32>
      %221 = arith.subf %206, %220 : vector<16x32xf32>
      %cst_79 = arith.constant 9.99999996E-13 : f32
      %222 = vector.broadcast %cst_79 : f32 to vector<16x1xf32>
      %223 = arith.addf %219, %222 : vector<16x1xf32>
      %224 = math.rsqrt %223 : vector<16x1xf32>
      %225 = vector.broadcast %224 : vector<16x1xf32> to vector<16x32xf32>
      %226 = arith.mulf %221, %225 : vector<16x32xf32>
      %227 = vector.broadcast %207 : vector<1x32xf32> to vector<16x32xf32>
      %228 = arith.mulf %226, %227 : vector<16x32xf32>
      %229 = vector.broadcast %208 : vector<1x32xf32> to vector<16x32xf32>
      %230 = arith.addf %228, %229 : vector<16x32xf32>
      %c0_80 = arith.constant 0 : index
      %c0_81 = arith.constant 0 : index
      %231 = vector.load %arg21[%c0_80, %c0_81] : memref<16x32xf32, #tpu.memory_space<vmem>>, vector<16x32xf32>
      tpu.vector_store %arg21[%c0_80, %c0_81], %230 {strides = array<i32>} : memref<16x32xf32, #tpu.memory_space<vmem>>, vector<16x32xf32>,
    } else {
    }
    %c0 = arith.constant 0 : index
    %c0_1 = arith.constant 0 : index
    %3 = vector.load %arg21[%c0, %c0_1] : memref<16x32xf32, #tpu.memory_space<vmem>>, vector<16x32xf32>
    %4 = arith.truncf %3 : vector<16x32xf32> to vector<16x32xbf16>
    %c0_2 = arith.constant 0 : index
    %c0_3 = arith.constant 0 : index
    %c0_4 = arith.constant 0 : index
    %5 = vector.load %arg6[%c0_2, %c0_3, %c0_4] : memref<1x32x96xbf16, #tpu.memory_space<vmem>>, vector<1x32x96xbf16>
    %6 = vector.shape_cast %5 : vector<1x32x96xbf16> to vector<32x96xbf16>
    %cst = arith.constant dense<0.000000e+00> : vector<16x96xf32>
    %7 = tpu.matmul %4, %6, %cst {dimension_numbers = #tpu.dot_dimension_numbers<[1], [0], [0], [1], [0, 0, 1, 1], [], []>} : vector<16x32xbf16>, vector<32x96xbf16>, vector<16x96xf32> -> vector<16x96xf32>
    %c0_5 = arith.constant 0 : index
    %c0_6 = arith.constant 0 : index
    %c0_7 = arith.constant 0 : index
    %8 = vector.load %arg7[%c0_5, %c0_6, %c0_7] : memref<1x1x96xf32, #tpu.memory_space<vmem>>, vector<1x1x96xf32>
    %9 = vector.shape_cast %8 : vector<1x1x96xf32> to vector<1x96xf32>
    %10 = vector.broadcast %9 : vector<1x96xf32> to vector<16x96xf32>
    %11 = arith.addf %7, %10 : vector<16x96xf32>
    %12 = vector.extract_strided_slice %11 {offsets = [0, 0], sizes = [16, 32], strides = [1, 1]} : vector<16x96xf32> to vector<16x32xf32>
    %13 = vector.extract_strided_slice %11 {offsets = [0, 32], sizes = [16, 32], strides = [1, 1]} : vector<16x96xf32> to vector<16x32xf32>
    %14 = vector.extract_strided_slice %11 {offsets = [0, 64], sizes = [16, 32], strides = [1, 1]} : vector<16x96xf32> to vector<16x32xf32>
    %15 = vector.extract_strided_slice %12 {offsets = [0, 0], sizes = [8, 8], strides = [1, 1]} : vector<16x32xf32> to vector<8x8xf32>
    %16 = vector.extract_strided_slice %12 {offsets = [8, 0], sizes = [8, 8], strides = [1, 1]} : vector<16x32xf32> to vector<8x8xf32>
    %17 = vector.extract_strided_slice %12 {offsets = [0, 8], sizes = [8, 8], strides = [1, 1]} : vector<16x32xf32> to vector<8x8xf32>
    %18 = vector.extract_strided_slice %12 {offsets = [8, 8], sizes = [8, 8], strides = [1, 1]} : vector<16x32xf32> to vector<8x8xf32>
    %19 = vector.extract_strided_slice %12 {offsets = [0, 16], sizes = [8, 8], strides = [1, 1]} : vector<16x32xf32> to vector<8x8xf32>
    %20 = vector.extract_strided_slice %12 {offsets = [8, 16], sizes = [8, 8], strides = [1, 1]} : vector<16x32xf32> to vector<8x8xf32>
    %21 = vector.extract_strided_slice %12 {offsets = [0, 24], sizes = [8, 8], strides = [1, 1]} : vector<16x32xf32> to vector<8x8xf32>
    %22 = vector.extract_strided_slice %12 {offsets = [8, 24], sizes = [8, 8], strides = [1, 1]} : vector<16x32xf32> to vector<8x8xf32>
    %23 = vector.shape_cast %15 : vector<8x8xf32> to vector<1x8x8xf32>
    %24 = vector.shape_cast %16 : vector<8x8xf32> to vector<1x8x8xf32>
    %25 = vector.shape_cast %17 : vector<8x8xf32> to vector<1x8x8xf32>
    %26 = vector.shape_cast %18 : vector<8x8xf32> to vector<1x8x8xf32>
    %27 = vector.shape_cast %19 : vector<8x8xf32> to vector<1x8x8xf32>
    %28 = vector.shape_cast %20 : vector<8x8xf32> to vector<1x8x8xf32>
    %29 = vector.shape_cast %21 : vector<8x8xf32> to vector<1x8x8xf32>
    %30 = vector.shape_cast %22 : vector<8x8xf32> to vector<1x8x8xf32>
    %31 = tpu.concatenate %23, %24, %25, %26, %27, %28, %29, %30 in 0 : vector<1x8x8xf32>, vector<1x8x8xf32>, vector<1x8x8xf32>, vector<1x8x8xf32>, vector<1x8x8xf32>, vector<1x8x8xf32>, vector<1x8x8xf32>, vector<1x8x8xf32> -> vector<8x8x8xf32>
    %32 = vector.extract_strided_slice %13 {offsets = [0, 0], sizes = [8, 8], strides = [1, 1]} : vector<16x32xf32> to vector<8x8xf32>
    %33 = vector.extract_strided_slice %13 {offsets = [8, 0], sizes = [8, 8], strides = [1, 1]} : vector<16x32xf32> to vector<8x8xf32>
    %34 = vector.extract_strided_slice %13 {offsets = [0, 8], sizes = [8, 8], strides = [1, 1]} : vector<16x32xf32> to vector<8x8xf32>
    %35 = vector.extract_strided_slice %13 {offsets = [8, 8], sizes = [8, 8], strides = [1, 1]} : vector<16x32xf32> to vector<8x8xf32>
    %36 = vector.extract_strided_slice %13 {offsets = [0, 16], sizes = [8, 8], strides = [1, 1]} : vector<16x32xf32> to vector<8x8xf32>
    %37 = vector.extract_strided_slice %13 {offsets = [8, 16], sizes = [8, 8], strides = [1, 1]} : vector<16x32xf32> to vector<8x8xf32>
    %38 = vector.extract_strided_slice %13 {offsets = [0, 24], sizes = [8, 8], strides = [1, 1]} : vector<16x32xf32> to vector<8x8xf32>
    %39 = vector.extract_strided_slice %13 {offsets = [8, 24], sizes = [8, 8], strides = [1, 1]} : vector<16x32xf32> to vector<8x8xf32>
    %40 = vector.shape_cast %32 : vector<8x8xf32> to vector<1x8x8xf32>
    %41 = vector.shape_cast %33 : vector<8x8xf32> to vector<1x8x8xf32>
    %42 = vector.shape_cast %34 : vector<8x8xf32> to vector<1x8x8xf32>
    %43 = vector.shape_cast %35 : vector<8x8xf32> to vector<1x8x8xf32>
    %44 = vector.shape_cast %36 : vector<8x8xf32> to vector<1x8x8xf32>
    %45 = vector.shape_cast %37 : vector<8x8xf32> to vector<1x8x8xf32>
    %46 = vector.shape_cast %38 : vector<8x8xf32> to vector<1x8x8xf32>
    %47 = vector.shape_cast %39 : vector<8x8xf32> to vector<1x8x8xf32>
    %48 = tpu.concatenate %40, %41, %42, %43, %44, %45, %46, %47 in 0 : vector<1x8x8xf32>, vector<1x8x8xf32>, vector<1x8x8xf32>, vector<1x8x8xf32>, vector<1x8x8xf32>, vector<1x8x8xf32>, vector<1x8x8xf32>, vector<1x8x8xf32> -> vector<8x8x8xf32>
    %49 = vector.extract_strided_slice %14 {offsets = [0, 0], sizes = [8, 8], strides = [1, 1]} : vector<16x32xf32> to vector<8x8xf32>
    %50 = vector.extract_strided_slice %14 {offsets = [8, 0], sizes = [8, 8], strides = [1, 1]} : vector<16x32xf32> to vector<8x8xf32>
    %51 = vector.extract_strided_slice %14 {offsets = [0, 8], sizes = [8, 8], strides = [1, 1]} : vector<16x32xf32> to vector<8x8xf32>
    %52 = vector.extract_strided_slice %14 {offsets = [8, 8], sizes = [8, 8], strides = [1, 1]} : vector<16x32xf32> to vector<8x8xf32>
    %53 = vector.extract_strided_slice %14 {offsets = [0, 16], sizes = [8, 8], strides = [1, 1]} : vector<16x32xf32> to vector<8x8xf32>
    %54 = vector.extract_strided_slice %14 {offsets = [8, 16], sizes = [8, 8], strides = [1, 1]} : vector<16x32xf32> to vector<8x8xf32>
    %55 = vector.extract_strided_slice %14 {offsets = [0, 24], sizes = [8, 8], strides = [1, 1]} : vector<16x32xf32> to vector<8x8xf32>
    %56 = vector.extract_strided_slice %14 {offsets = [8, 24], sizes = [8, 8], strides = [1, 1]} : vector<16x32xf32> to vector<8x8xf32>
    %57 = vector.shape_cast %49 : vector<8x8xf32> to vector<1x8x8xf32>
    %58 = vector.shape_cast %50 : vector<8x8xf32> to vector<1x8x8xf32>
    %59 = vector.shape_cast %51 : vector<8x8xf32> to vector<1x8x8xf32>
    %60 = vector.shape_cast %52 : vector<8x8xf32> to vector<1x8x8xf32>
    %61 = vector.shape_cast %53 : vector<8x8xf32> to vector<1x8x8xf32>
    %62 = vector.shape_cast %54 : vector<8x8xf32> to vector<1x8x8xf32>
    %63 = vector.shape_cast %55 : vector<8x8xf32> to vector<1x8x8xf32>
    %64 = vector.shape_cast %56 : vector<8x8xf32> to vector<1x8x8xf32>
    %65 = tpu.concatenate %57, %58, %59, %60, %61, %62, %63, %64 in 0 : vector<1x8x8xf32>, vector<1x8x8xf32>, vector<1x8x8xf32>, vector<1x8x8xf32>, vector<1x8x8xf32>, vector<1x8x8xf32>, vector<1x8x8xf32>, vector<1x8x8xf32> -> vector<8x8x8xf32>
    %c0_8 = arith.constant 0 : index
    %c0_9 = arith.constant 0 : index
    %c0_10 = arith.constant 0 : index
    %66 = vector.load %arg3[%c0_8, %c0_9, %c0_10] : memref<2x1x8xf32, #tpu.memory_space<vmem>>, vector<2x1x8xf32>
    %67 = tpu.concatenate %66, %66, %66, %66 in 0 : vector<2x1x8xf32>, vector<2x1x8xf32>, vector<2x1x8xf32>, vector<2x1x8xf32> -> vector<8x1x8xf32>
    %68 = arith.truncf %31 : vector<8x8x8xf32> to vector<8x8x8xbf16>
    %69 = arith.truncf %48 : vector<8x8x8xf32> to vector<8x8x8xbf16>
    "tpu.trace_start"() <{level = 10 : i32, message = "gqd,gkd->gqk"}> : () -> ()
    %cst_11 = arith.constant dense<0.000000e+00> : vector<8x8x8xf32>
    %70 = tpu.matmul %68, %69, %cst_11 {dimension_numbers = #tpu.dot_dimension_numbers<[2], [2], [1], [1], [0, 0, 0, 1, 1, 1], [0], [0]>} : vector<8x8x8xbf16>, vector<8x8x8xbf16>, vector<8x8x8xf32> -> vector<8x8x8xf32>
    "tpu.trace_stop"() : () -> ()
    %cst_12 = arith.constant 0.353553385 : f32
    %71 = vector.broadcast %cst_12 : f32 to vector<8x8x8xf32>
    %72 = arith.mulf %70, %71 : vector<8x8x8xf32>
    %73 = vector.broadcast %67 : vector<8x1x8xf32> to vector<8x8x8xf32>
    %74 = arith.addf %72, %73 : vector<8x8x8xf32>
    %cst_13 = arith.constant dense<0xFF800000> : vector<8x8xf32>
    %75 = vector.multi_reduction <maximumf>, %74, %cst_13 [2] : vector<8x8x8xf32> to vector<8x8xf32>
    %76 = vector.shape_cast %75 : vector<8x8xf32> to vector<8x8x1xf32>
    %77 = vector.broadcast %76 : vector<8x8x1xf32> to vector<8x8x8xf32>
    %78 = arith.subf %74, %77 : vector<8x8x8xf32>
    %79 = math.exp %78 : vector<8x8x8xf32>
    %cst_14 = arith.constant dense<0.000000e+00> : vector<8x8xf32>
    %80 = vector.multi_reduction <add>, %79, %cst_14 [2] : vector<8x8x8xf32> to vector<8x8xf32>
    %81 = vector.shape_cast %80 : vector<8x8xf32> to vector<8x8x1xf32>
    %82 = tpu.reciprocal %81 {approx = true} : vector<8x8x1xf32> -> vector<8x8x1xf32>
    %83 = vector.broadcast %82 : vector<8x8x1xf32> to vector<8x8x8xf32>
    %84 = arith.mulf %79, %83 : vector<8x8x8xf32>
    %85 = arith.truncf %84 : vector<8x8x8xf32> to vector<8x8x8xbf16>
    %86 = arith.truncf %65 : vector<8x8x8xf32> to vector<8x8x8xbf16>
    "tpu.trace_start"() <{level = 10 : i32, message = "gqk,gkd->gqd"}> : () -> ()
    %cst_15 = arith.constant dense<0.000000e+00> : vector<8x8x8xf32>
    %87 = tpu.matmul %85, %86, %cst_15 {dimension_numbers = #tpu.dot_dimension_numbers<[2], [1], [1], [2], [0, 0, 0, 1, 1, 2], [0], [0]>} : vector<8x8x8xbf16>, vector<8x8x8xbf16>, vector<8x8x8xf32> -> vector<8x8x8xf32>
    "tpu.trace_stop"() : () -> ()
    %88 = vector.extract_strided_slice %87 {offsets = [0, 0, 0], sizes = [1, 8, 8], strides = [1, 1, 1]} : vector<8x8x8xf32> to vector<1x8x8xf32>
    %89 = vector.shape_cast %88 : vector<1x8x8xf32> to vector<8x8xf32>
    %90 = vector.extract_strided_slice %87 {offsets = [2, 0, 0], sizes = [1, 8, 8], strides = [1, 1, 1]} : vector<8x8x8xf32> to vector<1x8x8xf32>
    %91 = vector.shape_cast %90 : vector<1x8x8xf32> to vector<8x8xf32>
    %92 = vector.extract_strided_slice %87 {offsets = [4, 0, 0], sizes = [1, 8, 8], strides = [1, 1, 1]} : vector<8x8x8xf32> to vector<1x8x8xf32>
    %93 = vector.shape_cast %92 : vector<1x8x8xf32> to vector<8x8xf32>
    %94 = vector.extract_strided_slice %87 {offsets = [6, 0, 0], sizes = [1, 8, 8], strides = [1, 1, 1]} : vector<8x8x8xf32> to vector<1x8x8xf32>
    %95 = vector.shape_cast %94 : vector<1x8x8xf32> to vector<8x8xf32>
    %96 = tpu.concatenate %89, %91, %93, %95 in 1 : vector<8x8xf32>, vector<8x8xf32>, vector<8x8xf32>, vector<8x8xf32> -> vector<8x32xf32>
    %97 = vector.extract_strided_slice %87 {offsets = [1, 0, 0], sizes = [1, 8, 8], strides = [1, 1, 1]} : vector<8x8x8xf32> to vector<1x8x8xf32>
    %98 = vector.shape_cast %97 : vector<1x8x8xf32> to vector<8x8xf32>
    %99 = vector.extract_strided_slice %87 {offsets = [3, 0, 0], sizes = [1, 8, 8], strides = [1, 1, 1]} : vector<8x8x8xf32> to vector<1x8x8xf32>
    %100 = vector.shape_cast %99 : vector<1x8x8xf32> to vector<8x8xf32>
    %101 = vector.extract_strided_slice %87 {offsets = [5, 0, 0], sizes = [1, 8, 8], strides = [1, 1, 1]} : vector<8x8x8xf32> to vector<1x8x8xf32>
    %102 = vector.shape_cast %101 : vector<1x8x8xf32> to vector<8x8xf32>
    %103 = vector.extract_strided_slice %87 {offsets = [7, 0, 0], sizes = [1, 8, 8], strides = [1, 1, 1]} : vector<8x8x8xf32> to vector<1x8x8xf32>
    %104 = vector.shape_cast %103 : vector<1x8x8xf32> to vector<8x8xf32>
    %105 = tpu.concatenate %98, %100, %102, %104 in 1 : vector<8x8xf32>, vector<8x8xf32>, vector<8x8xf32>, vector<8x8xf32> -> vector<8x32xf32>
    %106 = tpu.concatenate %96, %105 in 0 : vector<8x32xf32>, vector<8x32xf32> -> vector<16x32xf32>
    %107 = arith.truncf %106 : vector<16x32xf32> to vector<16x32xbf16>
    %c0_16 = arith.constant 0 : index
    %c0_17 = arith.constant 0 : index
    %c0_18 = arith.constant 0 : index
    %108 = vector.load %arg8[%c0_16, %c0_17, %c0_18] : memref<1x32x32xbf16, #tpu.memory_space<vmem>>, vector<1x32x32xbf16>
    %109 = vector.shape_cast %108 : vector<1x32x32xbf16> to vector<32x32xbf16>
    %cst_19 = arith.constant dense<0.000000e+00> : vector<16x32xf32>
    %110 = tpu.matmul %107, %109, %cst_19 {dimension_numbers = #tpu.dot_dimension_numbers<[1], [0], [0], [1], [0, 0, 1, 1], [], []>} : vector<16x32xbf16>, vector<32x32xbf16>, vector<16x32xf32> -> vector<16x32xf32>
    %c0_20 = arith.constant 0 : index
    %c0_21 = arith.constant 0 : index
    %c0_22 = arith.constant 0 : index
    %111 = vector.load %arg9[%c0_20, %c0_21, %c0_22] : memref<1x1x32xf32, #tpu.memory_space<vmem>>, vector<1x1x32xf32>
    %112 = vector.shape_cast %111 : vector<1x1x32xf32> to vector<1x32xf32>
    %113 = vector.broadcast %112 : vector<1x32xf32> to vector<16x32xf32>
    %114 = arith.addf %110, %113 : vector<16x32xf32>
    %115 = arith.addf %3, %114 : vector<16x32xf32>
    %c0_23 = arith.constant 0 : index
    %c0_24 = arith.constant 0 : index
    %c0_25 = arith.constant 0 : index
    %116 = vector.load %arg10[%c0_23, %c0_24, %c0_25] : memref<1x1x32xf32, #tpu.memory_space<vmem>>, vector<1x1x32xf32>
    %117 = vector.shape_cast %116 : vector<1x1x32xf32> to vector<1x32xf32>
    %c0_26 = arith.constant 0 : index
    %c0_27 = arith.constant 0 : index
    %c0_28 = arith.constant 0 : index
    %118 = vector.load %arg11[%c0_26, %c0_27, %c0_28] : memref<1x1x32xf32, #tpu.memory_space<vmem>>, vector<1x1x32xf32>
    %119 = vector.shape_cast %118 : vector<1x1x32xf32> to vector<1x32xf32>
    %cst_29 = arith.constant dense<0.000000e+00> : vector<16xf32>
    %120 = vector.multi_reduction <add>, %115, %cst_29 [1] : vector<16x32xf32> to vector<16xf32>
    %121 = vector.shape_cast %120 : vector<16xf32> to vector<16x1xf32>
    %cst_30 = arith.constant 3.200000e+01 : f32
    %122 = vector.broadcast %cst_30 : f32 to vector<16x1xf32>
    %123 = arith.divf %121, %122 : vector<16x1xf32>
    %124 = vector.broadcast %123 : vector<16x1xf32> to vector<16x32xf32>
    %125 = arith.subf %115, %124 : vector<16x32xf32>
    %126 = arith.mulf %125, %125 : vector<16x32xf32>
    %cst_31 = arith.constant dense<0.000000e+00> : vector<16xf32>
    %127 = vector.multi_reduction <add>, %126, %cst_31 [1] : vector<16x32xf32> to vector<16xf32>
    %128 = vector.shape_cast %127 : vector<16xf32> to vector<16x1xf32>
    %cst_32 = arith.constant 3.200000e+01 : f32
    %129 = vector.broadcast %cst_32 : f32 to vector<16x1xf32>
    %130 = arith.divf %128, %129 : vector<16x1xf32>
    %131 = vector.broadcast %123 : vector<16x1xf32> to vector<16x32xf32>
    %132 = arith.subf %115, %131 : vector<16x32xf32>
    %cst_33 = arith.constant 9.99999996E-13 : f32
    %133 = vector.broadcast %cst_33 : f32 to vector<16x1xf32>
    %134 = arith.addf %130, %133 : vector<16x1xf32>
    %135 = math.rsqrt %134 : vector<16x1xf32>
    %136 = vector.broadcast %135 : vector<16x1xf32> to vector<16x32xf32>
    %137 = arith.mulf %132, %136 : vector<16x32xf32>
    %138 = vector.broadcast %117 : vector<1x32xf32> to vector<16x32xf32>
    %139 = arith.mulf %137, %138 : vector<16x32xf32>
    %140 = vector.broadcast %119 : vector<1x32xf32> to vector<16x32xf32>
    %141 = arith.addf %139, %140 : vector<16x32xf32>
    %142 = arith.truncf %141 : vector<16x32xf32> to vector<16x32xbf16>
    %c0_34 = arith.constant 0 : index
    %c0_35 = arith.constant 0 : index
    %c0_36 = arith.constant 0 : index
    %143 = vector.load %arg12[%c0_34, %c0_35, %c0_36] : memref<1x32x64xbf16, #tpu.memory_space<vmem>>, vector<1x32x64xbf16>
    %144 = vector.shape_cast %143 : vector<1x32x64xbf16> to vector<32x64xbf16>
    %cst_37 = arith.constant dense<0.000000e+00> : vector<16x64xf32>
    %145 = tpu.matmul %142, %144, %cst_37 {dimension_numbers = #tpu.dot_dimension_numbers<[1], [0], [0], [1], [0, 0, 1, 1], [], []>} : vector<16x32xbf16>, vector<32x64xbf16>, vector<16x64xf32> -> vector<16x64xf32>
    %c0_38 = arith.constant 0 : index
    %c0_39 = arith.constant 0 : index
    %c0_40 = arith.constant 0 : index
    %146 = vector.load %arg13[%c0_38, %c0_39, %c0_40] : memref<1x1x64xf32, #tpu.memory_space<vmem>>, vector<1x1x64xf32>
    %147 = vector.shape_cast %146 : vector<1x1x64xf32> to vector<1x64xf32>
    %148 = vector.broadcast %147 : vector<1x64xf32> to vector<16x64xf32>
    %149 = arith.addf %145, %148 : vector<16x64xf32>
    %150 = arith.mulf %149, %149 : vector<16x64xf32>
    %151 = arith.mulf %149, %150 : vector<16x64xf32>
    %cst_41 = arith.constant 4.471500e-02 : f32
    %152 = vector.broadcast %cst_41 : f32 to vector<16x64xf32>
    %153 = arith.mulf %152, %151 : vector<16x64xf32>
    %154 = arith.addf %149, %153 : vector<16x64xf32>
    %cst_42 = arith.constant 0.797884583 : f32
    %155 = vector.broadcast %cst_42 : f32 to vector<16x64xf32>
    %156 = arith.mulf %155, %154 : vector<16x64xf32>
    %157 = math.tanh %156 : vector<16x64xf32>
    %cst_43 = arith.constant 1.000000e+00 : f32
    %158 = vector.broadcast %cst_43 : f32 to vector<16x64xf32>
    %159 = arith.addf %158, %157 : vector<16x64xf32>
    %cst_44 = arith.constant 5.000000e-01 : f32
    %160 = vector.broadcast %cst_44 : f32 to vector<16x64xf32>
    %161 = arith.mulf %160, %159 : vector<16x64xf32>
    %162 = arith.mulf %149, %161 : vector<16x64xf32>
    %163 = arith.truncf %162 : vector<16x64xf32> to vector<16x64xbf16>
    %c0_45 = arith.constant 0 : index
    %c0_46 = arith.constant 0 : index
    %c0_47 = arith.constant 0 : index
    %164 = vector.load %arg14[%c0_45, %c0_46, %c0_47] : memref<1x64x32xbf16, #tpu.memory_space<vmem>>, vector<1x64x32xbf16>
    %165 = vector.shape_cast %164 : vector<1x64x32xbf16> to vector<64x32xbf16>
    %cst_48 = arith.constant dense<0.000000e+00> : vector<16x32xf32>
    %166 = tpu.matmul %163, %165, %cst_48 {dimension_numbers = #tpu.dot_dimension_numbers<[1], [0], [0], [1], [0, 0, 1, 1], [], []>} : vector<16x64xbf16>, vector<64x32xbf16>, vector<16x32xf32> -> vector<16x32xf32>
    %c0_49 = arith.constant 0 : index
    %c0_50 = arith.constant 0 : index
    %c0_51 = arith.constant 0 : index
    %167 = vector.load %arg15[%c0_49, %c0_50, %c0_51] : memref<1x1x32xf32, #tpu.memory_space<vmem>>, vector<1x1x32xf32>
    %168 = vector.shape_cast %167 : vector<1x1x32xf32> to vector<1x32xf32>
    %169 = vector.broadcast %168 : vector<1x32xf32> to vector<16x32xf32>
    %170 = arith.addf %166, %169 : vector<16x32xf32>
    %171 = arith.addf %141, %170 : vector<16x32xf32>
    %c0_52 = arith.constant 0 : index
    %c0_53 = arith.constant 0 : index
    %c0_54 = arith.constant 0 : index
    %172 = vector.load %arg16[%c0_52, %c0_53, %c0_54] : memref<1x1x32xf32, #tpu.memory_space<vmem>>, vector<1x1x32xf32>
    %173 = vector.shape_cast %172 : vector<1x1x32xf32> to vector<1x32xf32>
    %c0_55 = arith.constant 0 : index
    %c0_56 = arith.constant 0 : index
    %c0_57 = arith.constant 0 : index
    %174 = vector.load %arg17[%c0_55, %c0_56, %c0_57] : memref<1x1x32xf32, #tpu.memory_space<vmem>>, vector<1x1x32xf32>
    %175 = vector.shape_cast %174 : vector<1x1x32xf32> to vector<1x32xf32>
    %cst_58 = arith.constant dense<0.000000e+00> : vector<16xf32>
    %176 = vector.multi_reduction <add>, %171, %cst_58 [1] : vector<16x32xf32> to vector<16xf32>
    %177 = vector.shape_cast %176 : vector<16xf32> to vector<16x1xf32>
    %cst_59 = arith.constant 3.200000e+01 : f32
    %178 = vector.broadcast %cst_59 : f32 to vector<16x1xf32>
    %179 = arith.divf %177, %178 : vector<16x1xf32>
    %180 = vector.broadcast %179 : vector<16x1xf32> to vector<16x32xf32>
    %181 = arith.subf %171, %180 : vector<16x32xf32>
    %182 = arith.mulf %181, %181 : vector<16x32xf32>
    %cst_60 = arith.constant dense<0.000000e+00> : vector<16xf32>
    %183 = vector.multi_reduction <add>, %182, %cst_60 [1] : vector<16x32xf32> to vector<16xf32>
    %184 = vector.shape_cast %183 : vector<16xf32> to vector<16x1xf32>
    %cst_61 = arith.constant 3.200000e+01 : f32
    %185 = vector.broadcast %cst_61 : f32 to vector<16x1xf32>
    %186 = arith.divf %184, %185 : vector<16x1xf32>
    %187 = vector.broadcast %179 : vector<16x1xf32> to vector<16x32xf32>
    %188 = arith.subf %171, %187 : vector<16x32xf32>
    %cst_62 = arith.constant 9.99999996E-13 : f32
    %189 = vector.broadcast %cst_62 : f32 to vector<16x1xf32>
    %190 = arith.addf %186, %189 : vector<16x1xf32>
    %191 = math.rsqrt %190 : vector<16x1xf32>
    %192 = vector.broadcast %191 : vector<16x1xf32> to vector<16x32xf32>
    %193 = arith.mulf %188, %192 : vector<16x32xf32>
    %194 = vector.broadcast %173 : vector<1x32xf32> to vector<16x32xf32>
    %195 = arith.mulf %193, %194 : vector<16x32xf32>
    %196 = vector.broadcast %175 : vector<1x32xf32> to vector<16x32xf32>
    %197 = arith.addf %195, %196 : vector<16x32xf32>
    %c0_63 = arith.constant 0 : index
    %c0_64 = arith.constant 0 : index
    %198 = vector.load %arg21[%c0_63, %c0_64] : memref<16x32xf32, #tpu.memory_space<vmem>>, vector<16x32xf32>
    tpu.vector_store %arg21[%c0_63, %c0_64], %197 {strides = array<i32>} : memref<16x32xf32, #tpu.memory_space<vmem>>, vector<16x32xf32>,
    %c1_i32 = arith.constant 1 : i32
    %199 = arith.cmpi eq, %arg1, %c1_i32 : i32
    %200 = arith.extui %199 : i1 to i32
    %c0_i32_65 = arith.constant 0 : i32
    %201 = arith.cmpi ne, %200, %c0_i32_65 : i32
    scf.if %201 {
      %202 = arith.truncf %197 : vector<16x32xf32> to vector<16x32xbf16>
      %c0_66 = arith.constant 0 : index
      %c0_67 = arith.constant 0 : index
      %203 = vector.load %arg18[%c0_66, %c0_67] : memref<32x128xbf16, #tpu.memory_space<vmem>>, vector<32x128xbf16>
      %cst_68 = arith.constant dense<0.000000e+00> : vector<16x128xf32>
      %204 = tpu.matmul %202, %203, %cst_68 {dimension_numbers = #tpu.dot_dimension_numbers<[1], [0], [0], [1], [0, 0, 1, 1], [], []>} : vector<16x32xbf16>, vector<32x128xbf16>, vector<16x128xf32> -> vector<16x128xf32>
      %c0_69 = arith.constant 0 : index
      %c0_70 = arith.constant 0 : index
      %205 = vector.load %arg19[%c0_69, %c0_70] : memref<1x128xf32, #tpu.memory_space<vmem>>, vector<1x128xf32>
      %206 = vector.broadcast %205 : vector<1x128xf32> to vector<16x128xf32>
      %207 = arith.addf %204, %206 : vector<16x128xf32>
      %208 = vector.extract_strided_slice %207 {offsets = [0, 0], sizes = [8, 128], strides = [1, 1]} : vector<16x128xf32> to vector<8x128xf32>
      %c0_71 = arith.constant 0 : index
      %c0_72 = arith.constant 0 : index
      %c0_73 = arith.constant 0 : index
      %209 = vector.load %arg20[%c0_71, %c0_72, %c0_73] : memref<2x8x128xf32, #tpu.memory_space<vmem>>, vector<1x8x128xf32>
      %210 = vector.shape_cast %209 : vector<1x8x128xf32> to vector<8x128xf32>
      %211 = vector.shape_cast %208 : vector<8x128xf32> to vector<1x8x128xf32>
      tpu.vector_store %arg20[%c0_71, %c0_72, %c0_73], %211 {strides = array<i32>} : memref<2x8x128xf32, #tpu.memory_space<vmem>>, vector<1x8x128xf32>,
      %212 = vector.extract_strided_slice %207 {offsets = [8, 0], sizes = [8, 128], strides = [1, 1]} : vector<16x128xf32> to vector<8x128xf32>
      %c1 = arith.constant 1 : index
      %c0_74 = arith.constant 0 : index
      %c0_75 = arith.constant 0 : index
      %213 = vector.load %arg20[%c1, %c0_74, %c0_75] : memref<2x8x128xf32, #tpu.memory_space<vmem>>, vector<1x8x128xf32>
      %214 = vector.shape_cast %213 : vector<1x8x128xf32> to vector<8x128xf32>
      %215 = vector.shape_cast %212 : vector<8x128xf32> to vector<1x8x128xf32>
      tpu.vector_store %arg20[%c1, %c0_74, %c0_75], %215 {strides = array<i32>} : memref<2x8x128xf32, #tpu.memory_space<vmem>>, vector<1x8x128xf32>,
    } else {
    }
    return
  }
  func.func @transform_0(%arg0: i32, %arg1: i32) -> (i32, i32, i32) {
    %c0_i32 = arith.constant 0 : i32
    %c0_i32_0 = arith.constant 0 : i32
    %c0_i32_1 = arith.constant 0 : i32
    return %arg0, %c0_i32, %c0_i32_0 : i32, i32, i32
  }
  func.func @transform_1(%arg0: i32, %arg1: i32) -> (i32, i32, i32) {
    %c0_i32 = arith.constant 0 : i32
    %c0_i32_0 = arith.constant 0 : i32
    %c0_i32_1 = arith.constant 0 : i32
    return %arg0, %c0_i32, %c0_i32_0 : i32, i32, i32
  }
  func.func @transform_2(%arg0: i32, %arg1: i32) -> (i32, i32) {
    %c0_i32 = arith.constant 0 : i32
    %c0_i32_0 = arith.constant 0 : i32
    %c0_i32_1 = arith.constant 0 : i32
    return %c0_i32, %c0_i32_0 : i32, i32
  }
  func.func @transform_3(%arg0: i32, %arg1: i32) -> (i32, i32) {
    %c0_i32 = arith.constant 0 : i32
    %c0_i32_0 = arith.constant 0 : i32
    %c0_i32_1 = arith.constant 0 : i32
    return %c0_i32, %c0_i32_0 : i32, i32
  }
  func.func @transform_4(%arg0: i32, %arg1: i32) -> (i32, i32, i32) {
    %c0_i32 = arith.constant 0 : i32
    %c0_i32_0 = arith.constant 0 : i32
    %c0_i32_1 = arith.constant 0 : i32
    return %arg1, %c0_i32, %c0_i32_0 : i32, i32, i32
  }
  func.func @transform_5(%arg0: i32, %arg1: i32) -> (i32, i32, i32) {
    %c0_i32 = arith.constant 0 : i32
    %c0_i32_0 = arith.constant 0 : i32
    %c0_i32_1 = arith.constant 0 : i32
    return %arg1, %c0_i32, %c0_i32_0 : i32, i32, i32
  }
  func.func @transform_6(%arg0: i32, %arg1: i32) -> (i32, i32, i32) {
    %c0_i32 = arith.constant 0 : i32
    %c0_i32_0 = arith.constant 0 : i32
    %c0_i32_1 = arith.constant 0 : i32
    return %arg1, %c0_i32, %c0_i32_0 : i32, i32, i32
  }
  func.func @transform_7(%arg0: i32, %arg1: i32) -> (i32, i32, i32) {
    %c0_i32 = arith.constant 0 : i32
    %c0_i32_0 = arith.constant 0 : i32
    %c0_i32_1 = arith.constant 0 : i32
    return %arg1, %c0_i32, %c0_i32_0 : i32, i32, i32
  }
  func.func @transform_8(%arg0: i32, %arg1: i32) -> (i32, i32, i32) {
    %c0_i32 = arith.constant 0 : i32
    %c0_i32_0 = arith.constant 0 : i32
    %c0_i32_1 = arith.constant 0 : i32
    return %arg1, %c0_i32, %c0_i32_0 : i32, i32, i32
  }
  func.func @transform_9(%arg0: i32, %arg1: i32) -> (i32, i32, i32) {
    %c0_i32 = arith.constant 0 : i32
    %c0_i32_0 = arith.constant 0 : i32
    %c0_i32_1 = arith.constant 0 : i32
    return %arg1, %c0_i32, %c0_i32_0 : i32, i32, i32
  }
  func.func @transform_10(%arg0: i32, %arg1: i32) -> (i32, i32, i32) {
    %c0_i32 = arith.constant 0 : i32
    %c0_i32_0 = arith.constant 0 : i32
    %c0_i32_1 = arith.constant 0 : i32
    return %arg1, %c0_i32, %c0_i32_0 : i32, i32, i32
  }
  func.func @transform_11(%arg0: i32, %arg1: i32) -> (i32, i32, i32) {
    %c0_i32 = arith.constant 0 : i32
    %c0_i32_0 = arith.constant 0 : i32
    %c0_i32_1 = arith.constant 0 : i32
    return %arg1, %c0_i32, %c0_i32_0 : i32, i32, i32
  }
  func.func @transform_12(%arg0: i32, %arg1: i32) -> (i32, i32, i32) {
    %c0_i32 = arith.constant 0 : i32
    %c0_i32_0 = arith.constant 0 : i32
    %c0_i32_1 = arith.constant 0 : i32
    return %arg1, %c0_i32, %c0_i32_0 : i32, i32, i32
  }
  func.func @transform_13(%arg0: i32, %arg1: i32) -> (i32, i32, i32) {
    %c0_i32 = arith.constant 0 : i32
    %c0_i32_0 = arith.constant 0 : i32
    %c0_i32_1 = arith.constant 0 : i32
    return %arg1, %c0_i32, %c0_i32_0 : i32, i32, i32
  }
  func.func @transform_14(%arg0: i32, %arg1: i32) -> (i32, i32, i32) {
    %c0_i32 = arith.constant 0 : i32
    %c0_i32_0 = arith.constant 0 : i32
    %c0_i32_1 = arith.constant 0 : i32
    return %arg1, %c0_i32, %c0_i32_0 : i32, i32, i32
  }
  func.func @transform_15(%arg0: i32, %arg1: i32) -> (i32, i32, i32) {
    %c0_i32 = arith.constant 0 : i32
    %c0_i32_0 = arith.constant 0 : i32
    %c0_i32_1 = arith.constant 0 : i32
    return %arg1, %c0_i32, %c0_i32_0 : i32, i32, i32
  }
  func.func @transform_16(%arg0: i32, %arg1: i32) -> (i32, i32) {
    %c0_i32 = arith.constant 0 : i32
    %c0_i32_0 = arith.constant 0 : i32
    %c0_i32_1 = arith.constant 0 : i32
    return %c0_i32, %c0_i32_0 : i32, i32
  }
  func.func @transform_17(%arg0: i32, %arg1: i32) -> (i32, i32) {
    %c0_i32 = arith.constant 0 : i32
    %c0_i32_0 = arith.constant 0 : i32
    %c0_i32_1 = arith.constant 0 : i32
    return %c0_i32, %c0_i32_0 : i32, i32
  }
  func.func @transform_18(%arg0: i32, %arg1: i32) -> (i32, i32, i32) {
    %c0_i32 = arith.constant 0 : i32
    %c0_i32_0 = arith.constant 0 : i32
    %c0_i32_1 = arith.constant 0 : i32
    return %arg0, %c0_i32, %c0_i32_0 : i32, i32, i32
  }
}

</mosaic_0001>

<bundles_post_ra>
// kernel: tpu_custom_call.1
= control target key start
LH: loop header
LB: loop body
LE: loop exit
PB: predicated region body
PF: predicated region fallthrough
CT: control target
= control target key end

     0   :  { %s4352_s0 = inlined_call_operand.hbm [shape: f32[2,8,32], index: 0, kind: input, shape index: {}]   ;;  %s4353_s1 = inlined_call_operand.hbm [shape: f32[2,1,8], index: 1, kind: input, shape index: {}]   ;;  %s4354_s2 = inlined_call_operand.vmem [shape: f32[1,32], index: 2, kind: input, shape index: {}]   ;;  %s4355_s3 = inlined_call_operand.hbm [shape: f32[1,32], index: 3, kind: input, shape index: {}]   ;;  %s4356_s4 = inlined_call_operand.vmem [shape: bf16[2,32,96], index: 4, kind: input, shape index: {}]   ;;  %s4357_s5 = inlined_call_operand.hbm [shape: f32[2,1,96], index: 5, kind: input, shape index: {}]   ;;  %s4358_s6 = inlined_call_operand.vmem [shape: bf16[2,32,32], index: 6, kind: input, shape index: {}]   ;;  %s4359_s7 = inlined_call_operand.hbm [shape: f32[2,1,32], index: 7, kind: input, shape index: {}]   ;;  %s4360_s8 = inlined_call_operand.hbm [shape: f32[2,1,32], index: 8, kind: input, shape index: {}]   ;;  %s4361_s9 = inlined_call_operand.hbm [shape: f32[2,1,32], index: 9, kind: input, shape index: {}]   ;;  %s4362_s10 = inlined_call_operand.vmem [shape: bf16[2,32,64], index: 10, kind: input, shape index: {}]   ;;  %s4363_s11 = inlined_call_operand.hbm [shape: f32[2,1,64], index: 11, kind: input, shape index: {}]   ;;  %s4364_s12 = inlined_call_operand.vmem [shape: bf16[2,64,32], index: 12, kind: input, shape index: {}]   ;;  %s4365_s13 = inlined_call_operand.hbm [shape: f32[2,1,32], index: 13, kind: input, shape index: {}]   ;;  %s4366_s14 = inlined_call_operand.vmem [shape: f32[2,1,32], index: 14, kind: input, shape index: {}]   ;;  %s4367_s15 = inlined_call_operand.vmem [shape: f32[2,1,32], index: 15, kind: input, shape index: {}]   ;;  %s4368_s16 = inlined_call_operand.vmem [shape: bf16[32,128], index: 16, kind: input, shape index: {}]   ;;  %s4369_s17 = inlined_call_operand.vmem [shape: f32[1,128], index: 17, kind: input, shape index: {}]   ;;  %s4370_s18 = inlined_call_operand.hbm [shape: f32[2,8,128], index: 18, kind: output, shape index: {}]  }
   0x1   :  { %4392 = sst [smem:[#allocation31_spill]] %s4352_s0 }
   0x2   :  { %4393 = sst [smem:[#allocation32_spill]] %s4353_s1 }
   0x3   :  { %4394 = sst [smem:[#allocation33_spill]] %s4354_s2 }
   0x4   :  { %4395 = sst [smem:[#allocation34_spill]] %s4355_s3 }
   0x5   :  { %4396 = sst [smem:[#allocation35_spill]] %s4356_s4 }
   0x6   :  { %4397 = sst [smem:[#allocation36_spill]] %s4357_s5 }
   0x7   :  { %4398 = sst [smem:[#allocation37_spill]] %s4358_s6 }
   0x8   :  { %4399 = sst [smem:[#allocation38_spill]] %s4360_s8 }
   0x9   :  { %4400 = sst [smem:[#allocation39_spill]] %s4362_s10 }
   0xa   :  { %4401 = sst [smem:[#allocation40_spill]] %s4363_s11 }
   0xb   :  { %4402 = sst [smem:[#allocation41_spill]] %s4364_s12 }
   0xc   :  { %4403 = sst [smem:[#allocation42_spill]] %s4366_s14 }
   0xd   :  { %4404 = sst [smem:[#allocation43_spill]] %s4367_s15 }
   0xe   :  { %4405 = sst [smem:[#allocation44_spill]] %s4368_s16 }
   0xf   :  { %4406 = sst [smem:[#allocation45_spill]] %s4369_s17 }
  0x10   :  { %4407 = sst [smem:[#allocation46_spill]] %s4370_s18 }
  0x11   :  { %23 = vsyncpa [#allocation4], 0 }
  0x12   :  { %24 = vsyncpa [#allocation7], 0 }
  0x13   :  { %25 = vsyncpa [#allocation10], 0 }
  0x14   :  { %27 = vsyncpa [#allocation10 + $0x1], 0 }
  0x15   :  { %28 = vsyncpa [#allocation13], 0 }
  0x16   :  { %30 = vsyncpa [#allocation13 + $0x1], 0 }
  0x17   :  { %31 = vsyncpa [#allocation16], 0 }
  0x18   :  { %33 = vsyncpa [#allocation16 + $0x1], 0 }
  0x19   :  { %34 = vsyncpa [#allocation5], 0  ;;  %s3663_s27 = smov 0   ;;  %s3665_s28 = smov 0  }
  0x1a   :  { %s3667_s29 = smov 0   ;;  %s3669_s30 = smov 0  }
  0x1b   :  { %s3671_s0 = smov 0   ;;  %s3673_s19 = smov 0  }
  0x1c LB: > { %4408 = sst [smem:[#allocation25_spill]] %s3527_s29  ;;  %s3692_s1 = sadd.s32 4294967295, %s3539_s19   ;;  %s3539_s19 = sphi %s3673_s19, %s40_s19   ;;  %s3535_s0 = sphi %s3671_s0, %s4472_s0   ;;  %s3531_s30 = sphi %s3669_s30, %s4471_s30   ;;  %s3527_s29 = sphi %s3667_s29, %s4470_s29   ;;  %s3523_s28 = sphi %s3665_s28, %s4474_s28   ;;  %s3519_s27 = sphi %s3663_s27, %s4473_s27  }
  0x1d   : > { %4409 = sst [smem:[#allocation26_spill]] %s3531_s30  ;;  %p186_p0 = scmp.ne.s32.totalorder %s3527_s29, %s3523_s28 }
  0x1e   : > { %4410 = sst [smem:[#allocation27_spill]] %s3535_s0  ;;  %p187_p1 = scmp.eq.s32.totalorder %s3539_s19, 0 }
  0x1f   : > { %4411 = sst [smem:[#allocation28_spill]] %s3539_s19  ;;  %p192_p2 = scmp.ne.s32.totalorder %s3523_s28, %s3519_s27 }
  0x20   : > { %p4375_p3 = scmp.eq.s32.totalorder %s3692_s1, 0  ;;  %p188_p4 = por %p187_p1, %p186_p0 }
  0x21   : > { %p2686_p5 = scmp.ge.s32.totalorder %s3539_s19, 1  ;;  %p531_p7 = scmp.lt.s32.totalorder %s3539_s19, 3 }
  0x22   : > { %p3703_p6 = por %p4375_p3, %p192_p2  ;;  %s3541_s2 = smov [#allocation6]  }
  0x23   : > { %p3708_p8 = pnand %p2686_p5, %p531_p7  ;;  %s562_s23 = sshll.u32 %s3541_s2, 4  ;;  %s563_s23 = int_to_ptr.vmem [resolvable:$true] %s562_s23 }
  0x24   : > { %s4412_s21 = scalar_select %p3703_p6, 1, 0 }
  0x25   : > { %s4413_s22 = scalar_select %p3708_p8, 1, 0 }
  0x26   : > { %p2982_p9 = pneg %p3708_p8  ;;  %p3014_p10 = scmp.lt.s32.totalorder %s3539_s19, 2 }
  0x27   : > { %s49_s26 = sadd.s32 1, %s3535_s0  ;;  %s4416_s18 = sld [smem:[#allocation32_spill]] }
  0x28   : > { %p3717_p11 = pnand %p2982_p9, %p4375_p3  ;;  %p3721_p12 = pnand %p3014_p10, %p188_p4 }
  0x2a   : > { %s4414_s24 = scalar_select %p3717_p11, 1, 0 }
  0x2b   : > { %s4415_s25 = scalar_select %p3721_p12, 1, 0 }
  0x2c   : > { %p3734_p0 = pneg %p3717_p11 }
  0x2d   : > { %s3179_s17 = scalar_lea.hbm %s4416_s18, 32 }
  0x2e   : > { %p3180_p13 = scmp.ne.s32.totalorder %s4416_s18, %s3179_s17  ;;  %p3186_p4 = scmp.lt.u32.totalorder %s3179_s17, %s4416_s18 }
  0x2f   : > { %s4417_s15 = scalar_select %p3734_p0, 1, 0 }
  0x30   : > { %p3182_p1 = pnand %p3734_p0, %p3180_p13 }
  0x32   : > { %p3183_p2 = pneg %p3182_p1 }
  0x34   : > { %p3188_p5 = pnand %p3186_p4, %p3183_p2 }
  0x36   : > { %3191 = shalt.err (!%p3188_p5)
}
  0x37   : > { %s3192_s20 = scalar_lea.vmem %s563_s23, 32  ;;  %p3200_p3 = scmp.lt.s32.totalorder %s563_s23, %s563_s23 }
  0x38   : > { %p3193_p7 = scmp.ne.s32.totalorder %s563_s23, %s3192_s20  ;;  %p3201_p6 = scmp.lt.s32.totalorder %s3192_s20, %s3192_s20 }
  0x3a   : > { %p3195_p9 = pnand %p3193_p7, %p3734_p0  ;;  %p3202_p8 = por %p3201_p6, %p3200_p3 }
  0x3c   : > { %p3196_p10 = pneg %p3195_p9 }
  0x3e   : > { %p3203_p12 = pnand %p3202_p8, %p3196_p10 }
  0x40   : > { %3206 = shalt.err (!%p3203_p12)
}
  0x41   : > { %s3542_s16 = smov 16   ;;  %s3543_s12 = smov 1  }
  0x42   : > { %2988 = dma.hbm_to_vmem [thread:$0]  (!%p3717_p11), %s4416_s18, 32, %s563_s23, [#allocation7], %s3542_s16, %s3542_s16, %s3543_s12  }
  0x43   : > { %p50_p13 = scmp.ge.s32.totalorder %s49_s26, 2  ;;  %s3751_s27 = sand.u32 1, %s3539_s19  }
  0x44   : > { %s3754_s2 = sand.u32 1, %s3527_s29   ;;  %s3761_s10 = sshll.u32 %s3535_s0, 4 }
  0x45   : > { %s4476_s26 = smov (%p50_p13, %s49_s26), 0  ;;  %s4419_s5 = sld [smem:[#allocation36_spill]] }
  0x46   : > { %4418 = sst [smem:[#allocation29_spill]] %s4476_s26  ;;  %s176_s20 = ssub.s32 %s3535_s0, %s4476_s26 }
  0x47   : > { %p177_p3 = scmp.eq.s32.totalorder %s176_s20, 0  ;;  %s607_s16 = scalar_lea.vmem [#allocation9], %s3754_s2 }
  0x48   : > { %s614_s12 = sshll.u32 %s607_s16, 4  ;;  %s4420_s14 = sadd.s32 1, %s3527_s29  ;;  %s3775_s12 = int_to_ptr.vmem [resolvable:$true] %s614_s12 }
  0x49   : > { %s3773_s17 = scalar_select %p177_p3, %s3527_s29, %s4420_s14  }
  0x4a   : > { %p4422_p8 = scmp.ne.s32.totalorder %s4415_s25, 0 }
  0x4b   : > { %s3767_s23 = scalar_lea.hbm %s4419_s5, %s3761_s10  ;;  %4421 = sst [smem:[#allocation30_spill]] %s3773_s17 }
  0x4c   : > { %s3207_s26 = scalar_lea.hbm %s3767_s23, 16  ;;  %p3782_p12 = pneg %p4422_p8 }
  0x4d   : > { %p3208_p6 = scmp.ne.s32.totalorder %s3767_s23, %s3207_s26  ;;  %s3212_s16 = scalar_lea.hbm %s4419_s5, 32 }
  0x4e   : > { %s4423_s20 = scalar_select %p3782_p12, 1, 0 }
  0x4f   : > { %p3210_p1 = pnand %p3782_p12, %p3208_p6  ;;  %p3213_p4 = scmp.lt.u32.totalorder %s3767_s23, %s4419_s5 }
  0x50   : > { %p3214_p5 = scmp.lt.u32.totalorder %s3212_s16, %s3207_s26  ;;  %p3216_p9 = scmp.lt.u32.totalorder %s3207_s26, %s3767_s23 }
  0x51   : > { %p3211_p2 = pneg %p3210_p1 }
  0x52   : > { %p3215_p7 = por %p3214_p5, %p3213_p4 }
  0x54   : > { %p3217_p10 = por %p3216_p9, %p3215_p7 }
  0x56   : > { %p3218_p13 = pnand %p3217_p10, %p3211_p2 }
  0x58   : > { %3221 = shalt.err (!%p3218_p13)
}
  0x59   : > { %s3222_s18 = scalar_lea.vmem %s3775_s12, 16  ;;  %s3544_s4 = smov [#allocation9]  }
  0x5a   : > { %p3223_p3 = scmp.ne.s32.totalorder %s3775_s12, %s3222_s18  ;;  %s3227_s6 = sshll.u32 %s3544_s4, 4  ;;  %s3228_s6 = int_to_ptr.vmem [resolvable:$false] %s3227_s6 }
  0x5b   : > { %s3229_s0 = scalar_lea.vmem %s3228_s6, 32  ;;  %p3230_p11 = scmp.lt.s32.totalorder %s3775_s12, %s3228_s6 }
  0x5c   : > { %p3225_p6 = pnand %p3223_p3, %p3782_p12  ;;  %p3231_p0 = scmp.lt.s32.totalorder %s3229_s0, %s3222_s18 }
  0x5e   : > { %p3226_p1 = pneg %p3225_p6  ;;  %p3232_p4 = por %p3231_p0, %p3230_p11 }
  0x60   : > { %p3233_p5 = pnand %p3232_p4, %p3226_p1 }
  0x62   : > { %3236 = shalt.err (!%p3233_p5)
}
  0x63   : > { %s4424_s26 = scalar_lea.sflag [#allocation10], %s3751_s27  ;;  %s4425_s8 = sld [smem:[#allocation38_spill]] }
  0x64   : > { %2995 = dma.hbm_to_vmem [thread:$0]  (!%p4422_p8), %s3767_s23, 16, %s3775_s12, %s4424_s26  }
  0x65   : > { %s649_s18 = scalar_lea.vmem [#allocation12], %s3754_s2 }
  0x66   : > { %s656_s6 = sshll.u32 %s649_s18, 4  ;;  %s657_s6 = int_to_ptr.vmem [resolvable:$true] %s656_s6 }
  0x69   : > { %s3811_s4 = scalar_lea.hbm %s4425_s8, %s3761_s10  ;;  %s3242_s12 = scalar_lea.hbm %s4425_s8, 32 }
  0x6a   : > { %s3237_s5 = scalar_lea.hbm %s3811_s4, 16  ;;  %p3243_p7 = scmp.lt.u32.totalorder %s3811_s4, %s4425_s8 }
  0x6b   : > { %p3238_p11 = scmp.ne.s32.totalorder %s3811_s4, %s3237_s5  ;;  %p3244_p9 = scmp.lt.u32.totalorder %s3242_s12, %s3237_s5 }
  0x6c   : > { %p3246_p13 = scmp.lt.u32.totalorder %s3237_s5, %s3811_s4 }
  0x6d   : > { %p3240_p0 = pnand %p3238_p11, %p3782_p12  ;;  %p3245_p10 = por %p3244_p9, %p3243_p7 }
  0x6f   : > { %p3241_p2 = pneg %p3240_p0  ;;  %p3247_p3 = por %p3246_p13, %p3245_p10 }
  0x71   : > { %p3248_p6 = pnand %p3247_p3, %p3241_p2 }
  0x73   : > { %3251 = shalt.err (!%p3248_p6)
}
  0x74   : > { %s3252_s14 = scalar_lea.vmem %s657_s6, 16  ;;  %s3545_s18 = smov [#allocation12]  }
  0x75   : > { %p3253_p1 = scmp.ne.s32.totalorder %s657_s6, %s3252_s14  ;;  %s3257_s0 = sshll.u32 %s3545_s18, 4  ;;  %s3258_s0 = int_to_ptr.vmem [resolvable:$false] %s3257_s0 }
  0x76   : > { %s3259_s17 = scalar_lea.vmem %s3258_s0, 32  ;;  %p3260_p11 = scmp.lt.s32.totalorder %s657_s6, %s3258_s0 }
  0x77   : > { %p3255_p4 = pnand %p3253_p1, %p3782_p12  ;;  %p3261_p0 = scmp.lt.s32.totalorder %s3259_s17, %s3252_s14 }
  0x79   : > { %p3256_p5 = pneg %p3255_p4  ;;  %p3262_p8 = por %p3261_p0, %p3260_p11 }
  0x7b   : > { %p3263_p7 = pnand %p3262_p8, %p3256_p5 }
  0x7d   : > { %3266 = shalt.err (!%p3263_p7)
}
  0x7e   : > { %p4426_p9 = scmp.ne.s32.totalorder %s4415_s25, 0  ;;  %s4427_s5 = scalar_lea.sflag [#allocation13], %s3751_s27 }
  0x7f   : > { %s4428_s11 = sld [smem:[#allocation40_spill]]  ;;  %s691_s0 = scalar_lea.vmem [#allocation15], %s3754_s2 }
  0x80   : > { %3001 = dma.hbm_to_vmem [thread:$0]  (!%p4426_p9), %s3811_s4, 16, %s657_s6, %s4427_s5  }
  0x81   : > { %s698_s16 = sshll.u32 %s691_s0, 4  ;;  %s699_s16 = int_to_ptr.vmem [resolvable:$true] %s698_s16 }
  0x85   : > { %s3838_s26 = scalar_lea.hbm %s4428_s11, %s3761_s10  ;;  %s3272_s6 = scalar_lea.hbm %s4428_s11, 32 }
  0x86   : > { %s3267_s18 = scalar_lea.hbm %s3838_s26, 16  ;;  %p3273_p13 = scmp.lt.u32.totalorder %s3838_s26, %s4428_s11 }
  0x87   : > { %p3268_p8 = scmp.ne.s32.totalorder %s3838_s26, %s3267_s18  ;;  %p3274_p3 = scmp.lt.u32.totalorder %s3272_s6, %s3267_s18 }
  0x88   : > { %p3276_p1 = scmp.lt.u32.totalorder %s3267_s18, %s3838_s26 }
  0x89   : > { %p3270_p2 = pnand %p3268_p8, %p3782_p12  ;;  %p3275_p6 = por %p3274_p3, %p3273_p13 }
  0x8b   : > { %p3271_p10 = pneg %p3270_p2  ;;  %p3277_p4 = por %p3276_p1, %p3275_p6 }
  0x8d   : > { %p3278_p5 = pnand %p3277_p4, %p3271_p10 }
  0x8f   : > { %3281 = shalt.err (!%p3278_p5)
}
  0x90   : > { %s3282_s12 = scalar_lea.vmem %s699_s16, 16  ;;  %s3546_s0 = smov [#allocation15]  }
  0x91   : > { %p3283_p11 = scmp.ne.s32.totalorder %s699_s16, %s3282_s12  ;;  %s3287_s14 = sshll.u32 %s3546_s0, 4  ;;  %s3288_s14 = int_to_ptr.vmem [resolvable:$false] %s3287_s14 }
  0x92   : > { %s3289_s17 = scalar_lea.vmem %s3288_s14, 32  ;;  %p3290_p8 = scmp.lt.s32.totalorder %s699_s16, %s3288_s14 }
  0x93   : > { %p3285_p0 = pnand %p3283_p11, %p3782_p12  ;;  %p3291_p2 = scmp.lt.s32.totalorder %s3289_s17, %s3282_s12 }
  0x95   : > { %p3286_p7 = pneg %p3285_p0  ;;  %p3292_p9 = por %p3291_p2, %p3290_p8 }
  0x97   : > { %p3293_p3 = pnand %p3292_p9, %p3286_p7 }
  0x99   : > { %3296 = shalt.err (!%p3293_p3)
}
  0x9a   : > { %p4429_p13 = scmp.ne.s32.totalorder %s4415_s25, 0  ;;  %s4430_s18 = scalar_lea.sflag [#allocation16], %s3751_s27 }
  0x9b   : > { %s3547_s4 = smov [#allocation3]   ;;  %s4431_s0 = sld [smem:[#allocation31_spill]] }
  0x9c   : > { %3007 = dma.hbm_to_vmem [thread:$0]  (!%p4429_p13), %s3838_s26, 16, %s699_s16, %s4430_s18  }
  0x9d   : > { %s546_s6 = sshll.u32 %s3547_s4, 4  ;;  %p4433_p9 = scmp.ne.s32.totalorder %s4417_s15, 0  ;;  %s547_s6 = int_to_ptr.vmem [resolvable:$true] %s546_s6 }
  0xa1   : > { %s4432_s8 = smov %s4431_s0  ;;  %s3297_s11 = scalar_lea.hbm %s4431_s0, 256 }
  0xa2   : > { %p3298_p10 = scmp.ne.s32.totalorder %s4432_s8, %s3297_s11  ;;  %p3304_p4 = scmp.lt.u32.totalorder %s3297_s11, %s4432_s8 }
  0xa4   : > { %p3300_p6 = pnand %p3298_p10, %p4433_p9 }
  0xa6   : > { %p3301_p1 = pneg %p3300_p6 }
  0xa8   : > { %p3306_p5 = pnand %p3304_p4, %p3301_p1 }
  0xaa   : > { %3309 = shalt.err (!%p3306_p5)
}
  0xab   : > { %s3310_s26 = scalar_lea.vmem %s547_s6, 256  ;;  %p3318_p8 = scmp.lt.s32.totalorder %s547_s6, %s547_s6 }
  0xac   : > { %p3311_p11 = scmp.ne.s32.totalorder %s547_s6, %s3310_s26  ;;  %p3319_p2 = scmp.lt.s32.totalorder %s3310_s26, %s3310_s26 }
  0xae   : > { %p3313_p0 = pnand %p3311_p11, %p4433_p9  ;;  %p3320_p3 = por %p3319_p2, %p3318_p8 }
  0xb0   : > { %p3314_p7 = pneg %p3313_p0 }
  0xb2   : > { %p3321_p13 = pnand %p3320_p3, %p3314_p7 }
  0xb4   : > { %3324 = shalt.err (!%p3321_p13)
}
  0xb5   : > { %s3548_s29 = smov 128   ;;  %s3549_s16 = smov 8  }
  0xb6   : > { %p4434_p10 = scmp.ne.s32.totalorder %s4414_s24, 0  ;;  %s3550_s4 = smov [#allocation8]  }
  0xb7   : > { %s579_s5 = sshll.u32 %s3550_s4, 4  ;;  %s3883_s14 = scalar_lea.hbm %s4359_s7, %s3761_s10  ;;  %s580_s5 = int_to_ptr.vmem [resolvable:$true] %s579_s5 }
  0xb8   : > { %2985 = dma.hbm_to_vmem [thread:$0]  (!%p4434_p10), %s4432_s8, 256, %s547_s6, [#allocation4], %s3548_s29, %s3548_s29, %s3549_s16  }
  0xb9   : > { %s4435_s3 = sld [smem:[#allocation34_spill]] }
  0xbf   : > { %s3325_s26 = scalar_lea.hbm %s4435_s3, 16 }
  0xc0   : > { %p3326_p13 = scmp.ne.s32.totalorder %s4435_s3, %s3325_s26  ;;  %p3332_p4 = scmp.lt.u32.totalorder %s3325_s26, %s4435_s3 }
  0xc2   : > { %p3328_p6 = pnand %p3326_p13, %p4433_p9 }
  0xc4   : > { %p3329_p1 = pneg %p3328_p6 }
  0xc6   : > { %p3334_p5 = pnand %p3332_p4, %p3329_p1 }
  0xc8   : > { %3337 = shalt.err (!%p3334_p5)
}
  0xc9   : > { %s3338_s16 = scalar_lea.vmem %s580_s5, 16  ;;  %s3345_s11 = scalar_lea.vmem %s580_s5, 32 }
  0xca   : > { %p3339_p11 = scmp.ne.s32.totalorder %s580_s5, %s3338_s16  ;;  %p3346_p8 = scmp.lt.s32.totalorder %s580_s5, %s580_s5 }
  0xcb   : > { %p3347_p2 = scmp.lt.s32.totalorder %s3345_s11, %s3338_s16 }
  0xcc   : > { %p3341_p0 = pnand %p3339_p11, %p4433_p9 }
  0xcd   : > { %p3348_p3 = por %p3347_p2, %p3346_p8 }
  0xce   : > { %p3342_p7 = pneg %p3341_p0 }
  0xd0   : > { %p3349_p12 = pnand %p3348_p3, %p3342_p7 }
  0xd2   : > { %3352 = shalt.err (!%p3349_p12)
}
  0xd3   : > { %2991 = dma.hbm_to_vmem [thread:$0]  (!%p4434_p10), %s4435_s3, 16, %s580_s5, [#allocation7]  }
  0xd4   : > { %s632_s15 = scalar_lea.vmem [#allocation11], %s3754_s2  ;;  %s3908_s0 = scalar_lea.hbm %s4361_s9, %s3761_s10 }
  0xd5   : > { %s639_s18 = sshll.u32 %s632_s15, 4  ;;  %s3353_s24 = scalar_lea.hbm %s3883_s14, 16  ;;  %s640_s18 = int_to_ptr.vmem [resolvable:$true] %s639_s18 }
  0xd6   : > { %p3354_p12 = scmp.ne.s32.totalorder %s3883_s14, %s3353_s24  ;;  %p4436_p9 = scmp.ne.s32.totalorder %s4423_s20, 0 }
  0xd7   : > { %s3358_s26 = scalar_lea.hbm %s4359_s7, 32  ;;  %p3359_p10 = scmp.lt.u32.totalorder %s3883_s14, %s4359_s7 }
  0xd8   : > { %p3356_p13 = pnand %p3354_p12, %p4436_p9  ;;  %p3360_p1 = scmp.lt.u32.totalorder %s3358_s26, %s3353_s24 }
  0xd9   : > { %p3362_p5 = scmp.lt.u32.totalorder %s3353_s24, %s3883_s14 }
  0xda   : > { %p3357_p6 = pneg %p3356_p13  ;;  %p3361_p4 = por %p3360_p1, %p3359_p10 }
  0xdc   : > { %p3363_p11 = por %p3362_p5, %p3361_p4 }
  0xde   : > { %p3364_p0 = pnand %p3363_p11, %p3357_p6 }
  0xe0   : > { %3367 = shalt.err (!%p3364_p0)
}
  0xe1   : > { %s3368_s5 = scalar_lea.vmem %s640_s18, 16  ;;  %s3551_s16 = smov [#allocation11]  }
  0xe2   : > { %p3369_p7 = scmp.ne.s32.totalorder %s640_s18, %s3368_s5  ;;  %s3373_s11 = sshll.u32 %s3551_s16, 4  ;;  %s3374_s11 = int_to_ptr.vmem [resolvable:$false] %s3373_s11 }
  0xe3   : > { %s3375_s30 = scalar_lea.vmem %s3374_s11, 32  ;;  %p3376_p3 = scmp.lt.s32.totalorder %s640_s18, %s3374_s11 }
  0xe4   : > { %p3371_p8 = pnand %p3369_p7, %p4436_p9  ;;  %p3377_p12 = scmp.lt.s32.totalorder %s3375_s30, %s3368_s5 }
  0xe6   : > { %p3372_p2 = pneg %p3371_p8  ;;  %p3378_p13 = por %p3377_p12, %p3376_p3 }
  0xe8   : > { %p3379_p1 = pnand %p3378_p13, %p3372_p2 }
  0xea   : > { %3382 = shalt.err (!%p3379_p1)
}
  0xeb   : > { %p4437_p10 = scmp.ne.s32.totalorder %s4415_s25, 0  ;;  %s4438_s19 = scalar_lea.sflag [#allocation10], %s3751_s27 }
  0xec   : > { %s666_s15 = scalar_lea.vmem [#allocation14], %s3754_s2  ;;  %s3934_s12 = scalar_lea.hbm %s4365_s13, %s3761_s10 }
  0xed   : > { %2998 = dma.hbm_to_vmem [thread:$0]  (!%p4437_p10), %s3883_s14, 16, %s640_s18, %s4438_s19  }
  0xee   : > { %s673_s4 = sshll.u32 %s666_s15, 4  ;;  %s3383_s17 = scalar_lea.hbm %s3908_s0, 16  ;;  %s674_s4 = int_to_ptr.vmem [resolvable:$true] %s673_s4 }
  0xef   : > { %p3384_p6 = scmp.ne.s32.totalorder %s3908_s0, %s3383_s17  ;;  %s3388_s29 = scalar_lea.hbm %s4361_s9, 32 }
  0xf0   : > { %p3389_p11 = scmp.lt.u32.totalorder %s3908_s0, %s4361_s9  ;;  %p3390_p0 = scmp.lt.u32.totalorder %s3388_s29, %s3383_s17 }
  0xf1   : > { %p3386_p4 = pnand %p3384_p6, %p4436_p9  ;;  %p3392_p8 = scmp.lt.u32.totalorder %s3383_s17, %s3908_s0 }
  0xf2   : > { %p3391_p7 = por %p3390_p0, %p3389_p11 }
  0xf3   : > { %p3387_p5 = pneg %p3386_p4 }
  0xf4   : > { %p3393_p2 = por %p3392_p8, %p3391_p7 }
  0xf6   : > { %p3394_p3 = pnand %p3393_p2, %p3387_p5 }
  0xf8   : > { %3397 = shalt.err (!%p3394_p3)
}
  0xf9   : > { %s3398_s10 = scalar_lea.vmem %s674_s4, 16  ;;  %s3552_s14 = smov [#allocation14]  }
  0xfa   : > { %p3399_p12 = scmp.ne.s32.totalorder %s674_s4, %s3398_s10  ;;  %s3403_s18 = sshll.u32 %s3552_s14, 4  ;;  %s3404_s18 = int_to_ptr.vmem [resolvable:$false] %s3403_s18 }
  0xfb   : > { %s3405_s11 = scalar_lea.vmem %s3404_s18, 32  ;;  %p3406_p6 = scmp.lt.s32.totalorder %s674_s4, %s3404_s18 }
  0xfc   : > { %p3401_p13 = pnand %p3399_p12, %p4436_p9  ;;  %p3407_p4 = scmp.lt.s32.totalorder %s3405_s11, %s3398_s10 }
  0xfe   : > { %p3402_p1 = pneg %p3401_p13  ;;  %p3408_p10 = por %p3407_p4, %p3406_p6 }
 0x100   : > { %p3409_p0 = pnand %p3408_p10, %p3402_p1 }
 0x102   : > { %3412 = shalt.err (!%p3409_p0)
}
 0x103   : > { %p4439_p11 = scmp.ne.s32.totalorder %s4415_s25, 0  ;;  %s4440_s30 = scalar_lea.sflag [#allocation13], %s3751_s27 }
 0x104   : > { %s716_s19 = scalar_lea.vmem [#allocation17], %s3754_s2  ;;  %s3413_s23 = scalar_lea.hbm %s3934_s12, 16 }
 0x105   : > { %3004 = dma.hbm_to_vmem [thread:$0]  (!%p4439_p11), %s3908_s0, 16, %s674_s4, %s4440_s30  }
 0x106   : > { %s723_s15 = sshll.u32 %s716_s19, 4  ;;  %p3414_p5 = scmp.ne.s32.totalorder %s3934_s12, %s3413_s23  ;;  %s724_s15 = int_to_ptr.vmem [resolvable:$true] %s723_s15 }
 0x107   : > { %s3418_s26 = scalar_lea.hbm %s4365_s13, 32  ;;  %p3419_p8 = scmp.lt.u32.totalorder %s3934_s12, %s4365_s13 }
 0x108   : > { %p3416_p10 = pnand %p3414_p5, %p4436_p9  ;;  %p3420_p2 = scmp.lt.u32.totalorder %s3418_s26, %s3413_s23 }
 0x109   : > { %p3422_p12 = scmp.lt.u32.totalorder %s3413_s23, %s3934_s12 }
 0x10a   : > { %p3417_p7 = pneg %p3416_p10  ;;  %p3421_p3 = por %p3420_p2, %p3419_p8 }
 0x10c   : > { %p3423_p13 = por %p3422_p12, %p3421_p3 }
 0x10e   : > { %p3424_p1 = pnand %p3423_p13, %p3417_p7 }
 0x110   : > { %3427 = shalt.err (!%p3424_p1)
}
 0x111   : > { %s3428_s2 = scalar_lea.vmem %s724_s15, 16  ;;  %s3553_s0 = smov [#allocation17]  }
 0x112   : > { %p3429_p6 = scmp.ne.s32.totalorder %s724_s15, %s3428_s2  ;;  %s3433_s4 = sshll.u32 %s3553_s0, 4  ;;  %s3434_s4 = int_to_ptr.vmem [resolvable:$false] %s3433_s4 }
 0x113   : > { %s3435_s5 = scalar_lea.vmem %s3434_s4, 32  ;;  %p3436_p5 = scmp.lt.s32.totalorder %s724_s15, %s3434_s4 }
 0x114   : > { %p3431_p4 = pnand %p3429_p6, %p4436_p9  ;;  %p3437_p10 = scmp.lt.s32.totalorder %s3435_s5, %s3428_s2 }
 0x116   : > { %p3432_p0 = pneg %p3431_p4  ;;  %p3438_p11 = por %p3437_p10, %p3436_p5 }
 0x118   : > { %p3439_p2 = pnand %p3438_p11, %p3432_p0 }
 0x11a   : > { %3442 = shalt.err (!%p3439_p2)
}
 0x11b   : > { %p4441_p8 = scmp.ne.s32.totalorder %s4415_s25, 0  ;;  %s4442_s16 = scalar_lea.sflag [#allocation16], %s3751_s27 }
 0x11c   : > { %p4443_p7 = scmp.ne.s32.totalorder %s4413_s22, 0 }
 0x11d   : > { %3010 = dma.hbm_to_vmem [thread:$0]  (!%p4441_p8), %s3934_s12, 16, %s724_s15, %s4442_s16  }
 0x11e   : > { %744 = sbr.rel (%p4443_p7) target bundleno = 3591 (0xe07), region = 92  ;;  %p4444_p9 = scmp.eq.s32.totalorder (!%p4443_p7), %s3692_s1, 0 }
 0x125   : > { %3494 = dma.done.wait (%p4444_p9), [#allocation4], 256   ;;  %p4445_p3 = pmov %p4444_p9 }
 0x127   : > { %3496 = vsyncadd (%p4445_p3), [#allocation4], 4294967040  ;;  %p4446_p12 = pmov %p4445_p3 }
 0x128   : > { %p4447_p11 = pmov %p4445_p3 }
 0x129   : > { %3498 = dma.done.wait (%p4446_p12), [#allocation7], 48  }
 0x12a   : > { %3500 = vsyncadd (%p4447_p11), [#allocation7], 4294967248  ;;  %s758_s25 = sand.u32 1, %s3692_s1   ;;  %s3987_s27 = sand.u32 1, %s3523_s28  }
 0x12b   : > { %s759_s22 = scalar_lea.sflag [#allocation10], %s758_s25  ;;  %p4448_p13 = scmp.ne.s32.totalorder %s4412_s21, 0 }
 0x12d   : > { %3502 = dma.done.wait (%p4448_p13), %s759_s22, 32  }
 0x12e   : > { %3504 = vsyncadd (%p4448_p13), %s759_s22, 4294967264  ;;  %s775_s10 = scalar_lea.sflag [#allocation13], %s758_s25 }
 0x12f   : > { %3506 = dma.done.wait (%p4448_p13), %s775_s10, 32  }
 0x130   : > { %3508 = vsyncadd (%p4448_p13), %s775_s10, 4294967264  ;;  %s791_s11 = scalar_lea.sflag [#allocation16], %s758_s25 }
 0x131   : > { %3510 = dma.done.wait (%p4448_p13), %s791_s11, 32  }
 0x132   : > { %3512 = vsyncadd (%p4448_p13), %s791_s11, 4294967264  ;;  %s4449_s19 = sld [smem:[#allocation26_spill]]  ;;  %s4450_s6 = sld [smem:[#allocation35_spill]] }
 0x133   : > { %s4451_s0 = sld [smem:[#allocation37_spill]]  ;;  %s4452_s25 = sld [smem:[#allocation39_spill]] }
 0x134   : > { %s4453_s30 = sld [smem:[#allocation41_spill]]  ;;  %s4454_s17 = sld [smem:[#allocation42_spill]] }
 0x135   : > { %s4455_s3 = sld [smem:[#allocation43_spill]]  ;;  %s801_s21 = scalar_lea.vmem [#allocation17], %s3987_s27 }
 0x138   : > { %p896_p1 = scmp.lt.s32.totalorder %s4449_s19, 1  ;;  %p2709_p6 = scmp.ne.s32.totalorder %s4449_s19, 0 }
 0x139   : > { %v928_v0 = vld [vmem:[#allocation3] sm:$0xff] (!%p2709_p6)  ;;  %vm933_vm0 = vcmask (!%p2709_p6), 261120   ;;  %v930_v1 = vld [vmem:[#allocation3 + $0x8] sm:$0xff] (!%p2709_p6)  ;;  %s4456_s12 = sld [smem:[#allocation33_spill]] (!%p2709_p6)  ;;  %v2711_v23 = vld [vmem:[#allocation8] ss:$0 sm:$0xff] (!%p2709_p6) }
 0x13a   : > { %s4008_s15 = scalar_select %p896_p1, %s4449_s19, 1 }
 0x13b   : > { %927 = sbr.rel (%p2709_p6) target bundleno = 633 (0x279), region = 132  ;;  %v934_v2 = vsel (!%p2709_p6), %vm933_vm0, %v928_v0, 0.0  ;;  %v937_v3 = vsel (!%p2709_p6), %vm933_vm0, %v930_v1, 0.0 }
 0x13c   : > { %s2761_s23 = sshll.u32 %s4008_s15, 4  ;;  %s2764_s24 = sshll.u32 %s4008_s15, 5  ;;  %935 = vadd.xlane.f32.xlu0 (!%p2709_p6), %v934_v2 }
 0x13d   : > { %s4015_s29 = scalar_lea.vmem %s4450_s6, %s2761_s23  ;;  %s4020_s4 = scalar_lea.vmem %s4451_s0, %s2761_s23 }
 0x13e   : > { %s4025_s22 = scalar_lea.vmem %s4452_s25, %s2761_s23  ;;  %s4030_s18 = scalar_lea.vmem %s4453_s30, %s2764_s24 }
 0x13f   : > { %s918_s26 = scalar_lea.vmem %s4454_s17, %s4008_s15  ;;  %s921_s2 = scalar_lea.vmem %s4455_s3, %s4008_s15  ;;  %v2710_v21 = vld [vmem:[%s4456_s12] ss:$0 sm:$0xff] (!%p2709_p6) }
 0x140   : > { %938 = vadd.xlane.f32.xlu0 (!%p2709_p6), %v937_v3 }
 0x1c9   : > { %v936_v4 = vpop.xlane.xlu0 %935 }
 0x1ca   : > { %v941_v5 = vmul.f32 0.03125, %v936_v4 }
 0x1cc   : > { %v943_v6 = vsub.f32 %v928_v0, %v941_v5 }
 0x1cd   : > { %v939_v7 = vpop.xlane.xlu0 %938 }
 0x1ce   : > { %v942_v8 = vmul.f32 0.03125, %v939_v7  ;;  %v945_v9 = vmul.f32 %v943_v6, %v943_v6 }
 0x1d0   : > { %v944_v10 = vsub.f32 %v930_v1, %v942_v8  ;;  %v947_v11 = vsel %vm933_vm0, %v945_v9, 0.0 }
 0x1d1   : > { %948 = vadd.xlane.f32.xlu1 %v947_v11 }
 0x1d2   : > { %v946_v12 = vmul.f32 %v944_v10, %v944_v10 }
 0x1d4   : > { %v950_v13 = vsel %vm933_vm0, %v946_v12, 0.0 }
 0x1d5   : > { %951 = vadd.xlane.f32.xlu1 %v950_v13 }
 0x25e   : > { %v949_v14 = vpop.xlane.xlu1 %948 }
 0x25f   : > { %v953_v15 = vmul.f32 0.03125, %v949_v14 }
 0x261   : > { %v955_v16 = vadd.f32 1e-12, %v953_v15 }
 0x262   : > { %v952_v17 = vpop.xlane.xlu1 %951 }
 0x263   : > { %3089 = vrsqrt.f32 %v955_v16  ;;  %v954_v18 = vmul.f32 0.03125, %v952_v17 }
 0x265   : > { %v956_v19 = vadd.f32 1e-12, %v954_v18 }
 0x267   : > { %3091 = vrsqrt.f32 %v956_v19 }
 0x26d   : > { %v3090_v20 = vpop.eup %3089 }
 0x26e   : > { %v959_v22 = vmul.f32 %v3090_v20, %v943_v6 }
 0x270   : > { %v967_v24 = vmul.f32 %v2710_v21, %v959_v22 }
 0x271   : > { %v3092_v25 = vpop.eup %3091 }
 0x272   : > { %v975_v26 = vadd.f32 %v2711_v23, %v967_v24  ;;  %v960_v27 = vmul.f32 %v3092_v25, %v944_v10 }
 0x274   : > { %977 = vst.msk [vmem:[#allocation2] sm:$0xff] %vm933_vm0, %v975_v26  ;;  %v968_v28 = vmul.f32 %v2710_v21, %v960_v27 }
 0x276   : > { %v976_v29 = vadd.f32 %v2711_v23, %v968_v28 }
 0x278   : > { %978 = vst.msk [vmem:[#allocation2 + $0x8] sm:$0xff] %vm933_vm0, %v976_v29 }
 0x279 PF: > { %v3123_v30 = vld [vmem:[%s4015_s29] sm:$0xff]   ;;  %v3554_v31 = vmov 0.0   ;;  %v3124_v32 = vld [vmem:[%s4015_s29 + $0x8] sm:$0xff]   ;;  %vm3555_vm1 = vmmov 0   ;;  %vm1005_vm2 = vcmask 261120   ;;  %s4457_s14 = scalar_lea.vmem [#allocation9], %s3987_s27 }
 0x27a   : > { %2814 = vmatprep.subr.bf16.mxu0 %v3554_v31  ;;  %2822 = vmatprep.subr.bf16.mxu1 %v3554_v31  ;;  %v2712_v36 = vld [vmem:[%s4457_s14] ss:$0 sm:$0xff]  ;;  %s3556_s30 = smov 104   ;;  %s3557_s19 = smov 120   ;;  %vm1083_vm3 = vcmask 64512   ;;  %vm1602_vm4 = vcmask 1043456  }
 0x27b   : > { %2815 = vmatpush3.bf16.msra.mxu0 %v3123_v30  ;;  %2818 = vmatprep.mubr.msk.bf16.mxu0 %vm3555_vm1, %v3554_v31  ;;  %v4057_v33 = vld [vmem:[#allocation2] sm:$0xff]  ;;  %s3558_s23 = smov 96   ;;  %s3559_s24 = smov 112   ;;  %vm1995_vm5 = vcmask 130048   ;;  %vm1997_vm6 = vcmask 195584   ;;  %vm2255_vm7 = vcmask 523264  }
 0x27c   : > { %2816 = vmatprep.subr.bf16.mxu0 %v3554_v31  ;;  %2824 = vmatprep.mubr.msk.bf16.mxu1 %vm3555_vm1, %v3554_v31  ;;  %s3560_s29 = smov 64   ;;  %v2724_v18 = vld [vmem:[#allocation6] ss:$0 sm:$0xff]  ;;  %v2725_v25 = vld [vmem:[#allocation6 + $0x1] ss:$0 sm:$0xff]  ;;  %s3561_s0 = smov 8  }
 0x27d   : > { %s3562_s5 = smov 16   ;;  %s3563_s16 = smov 24  }
 0x27e   : > { %s4459_s25 = scalar_lea.vmem [#allocation12], %s3987_s27  ;;  %s4461_s10 = scalar_lea.vmem [#allocation15], %s3987_s27 }
 0x27f   : > { %v4059_v34 = vld [vmem:[#allocation2 + $0x8] sm:$0xff]  ;;  %2817 = vmatpush3.bf16.msra.mxu0 %v3124_v32  ;;  %s4464_s3 = sld [smem:[#allocation26_spill]] }
 0x280   : > { %v981_v35 = vpack.c.bf16 %v4059_v34, %v4057_v33  ;;  %2828 = vmatprep.subr.bf16.mxu0 %v3554_v31 }
 0x282   : > { %2819 = vmatmul.mubr.msk.bf16.vlgmr.msra.gmra.mrb[0].mxu0 %vm1005_vm2, %v981_v35 }
 0x283   : > { %2830 = vmatprep.mubr.msk.bf16.mxu0 %vm3555_vm1, %v3554_v31 }
 0x285   : > { %p2752_p4 = scmp.ne.s32.totalorder %s4464_s3, 1 }
 0x286   : > { %s4465_s12 = sld [smem:[#allocation44_spill]] (!%p2752_p4)  ;;  %vm3565_vm8 = vmmov (!%p2752_p4), 0  }
 0x355   : > { %v1043_v37 = vpop.f32.mrb[0].mxu0 }
 0x356   : > { %v2820_v38 = vpop.f32.mrb[1].mxu0  ;;  %v1044_v40 = vadd.f32 %v2712_v36, %v1043_v37 }
 0x357   : > { %v1046_v39 = vpop.f32.mrb[2].mxu0 }
 0x358   : > { %v1047_v41 = vadd.f32 %v2712_v36, %v1046_v39  ;;  %v2821_v42 = vpop.f32.mrb[3].mxu0  ;;  %v1072_v44 = vpack.c.bf16 %v1044_v40, %v1044_v40 }
 0x35a   : > { %v3103_v43 = vpack.i.bf16 %v1047_v41, %v1044_v40  ;;  %v1073_v45 = vpack.c.bf16 %v1047_v41, %v1047_v41 }
 0x35c   : > { %3104 = vrot.lane.b32.xlu1 %v3103_v43, %s3556_s30  ;;  %3094 = vrot.lane.b32.xlu0 %v3103_v43, %s3557_s19  ;;  %s4466_s19 = sld [smem:[#allocation45_spill]] (!%p2752_p4) }
 0x360   : > { %1081 = vrot.lane.b32.xlu1 %v1072_v44, %s3558_s23  ;;  %3099 = vrot.lane.b32.xlu0 %v3103_v43, %s3559_s24 }
 0x364   : > { %1131 = vrot.lane.b32.xlu0 %v1073_v45, %s3558_s23 }
 0x3ce   : > { %v3105_v46 = vpop.permute.xlu1 %3104  ;;  %v3095_v47 = vpop.permute.xlu0 %3094 }
 0x3cf   : > { %v3097_v48 = vunpack.i.h.bf16 %v3095_v47  ;;  %v3096_v49 = vunpack.i.l.bf16 %v3095_v47  ;;  %v3106_v57 = vunpack.i.l.bf16 %v3105_v46  ;;  %v3107_v60 = vunpack.i.h.bf16 %v3105_v46 }
 0x3d1   : > { %v4074_v50 = vpack.c.bf16 %v3097_v48, %v3097_v48  ;;  %v4076_v51 = vpack.c.bf16 %v3096_v49, %v3096_v49  ;;  %v4093_v63 = vpack.c.bf16 %v3106_v57, %v3106_v57  ;;  %v4096_v0 = vpack.c.bf16 %v3107_v60, %v3107_v60 }
 0x3d2   : > { %v1082_v52 = vpop.permute.xlu1 %1081  ;;  %v3100_v53 = vpop.permute.xlu0 %3099 }
 0x3d3   : > { %v3102_v54 = vunpack.i.h.bf16 %v3100_v53  ;;  %v3101_v55 = vunpack.i.l.bf16 %v3100_v53  ;;  %1180 = vrot.lane.b32.xlu1 %v4076_v51, %s3558_s23  ;;  %1229 = vrot.lane.b32.xlu0 %v4074_v50, %s3558_s23  ;;  %v1088_v56 = vsel %vm1083_vm3, %v1082_v52, 0 }
 0x3d4   : > { %2823 = vmatpush3.bf16.xpose.msra.mxu1 %v1088_v56 }
 0x3d5   : > { %v4083_v58 = vpack.c.bf16 %v3102_v54, %v3102_v54  ;;  %v4085_v59 = vpack.c.bf16 %v3101_v55, %v3101_v55  ;;  %2834 = vmatprep.subr.bf16.mxu1 %v3554_v31 }
 0x3d6   : > { %v1132_v61 = vpop.permute.xlu0 %1131 }
 0x3d7   : > { %v1137_v62 = vsel %vm1083_vm3, %v1132_v61, 0  ;;  %1278 = vrot.lane.b32.xlu1 %v4085_v59, %s3558_s23  ;;  %1327 = vrot.lane.b32.xlu0 %v4083_v58, %s3558_s23 }
 0x3d8   : > { %2829 = vmatpush3.bf16.xpose.msra.mxu0 %v1137_v62 }
 0x3d9   : > { %2840 = vmatprep.subr.bf16.mxu0 %v3554_v31 }
 0x3db   : > { %2825 = vmatmul.mubr.msk.bf16.vlgmr.msra.gmra.mrb[0].mxu1 %vm1083_vm3, %v1072_v44  ;;  %1376 = vrot.lane.b32.xlu1 %v4093_v63, %s3558_s23 }
 0x3dc   : > { %1425 = vrot.lane.b32.xlu0 %v4096_v0, %s3558_s23  ;;  %2836 = vmatprep.mubr.msk.bf16.mxu1 %vm3555_vm1, %v3554_v31 }
 0x3df   : > { %1646 = vrot.lane.b32.xlu1 %v1073_v45, %s3560_s29  ;;  %2831 = vmatmul.mubr.msk.bf16.vlgmr.msra.gmra.mrb[4].mxu0 %vm1083_vm3, %v1073_v45 }
 0x3e0   : > { %1597 = vrot.lane.b32.xlu0 %v1072_v44, %s3560_s29  ;;  %2842 = vmatprep.mubr.msk.bf16.mxu0 %vm3555_vm1, %v3554_v31 }
 0x445   : > { %v1181_v1 = vpop.permute.xlu1 %1180  ;;  %v1230_v2 = vpop.permute.xlu0 %1229 }
 0x446   : > { %v1186_v3 = vsel %vm1083_vm3, %v1181_v1, 0  ;;  %v1235_v4 = vsel %vm1083_vm3, %v1230_v2, 0 }
 0x447   : > { %2835 = vmatpush3.bf16.xpose.msra.mxu1 %v1186_v3  ;;  %2841 = vmatpush3.bf16.xpose.msra.mxu0 %v1235_v4 }
 0x448   : > { %2846 = vmatprep.subr.bf16.mxu1 %v3554_v31  ;;  %2852 = vmatprep.subr.bf16.mxu0 %v3554_v31 }
 0x449   : > { %v1279_v5 = vpop.permute.xlu1 %1278  ;;  %v1328_v6 = vpop.permute.xlu0 %1327 }
 0x44a   : > { %v1284_v7 = vsel %vm1083_vm3, %v1279_v5, 0  ;;  %v1333_v8 = vsel %vm1083_vm3, %v1328_v6, 0 }
 0x44d   : > { %v1377_v9 = vpop.permute.xlu1 %1376 }
 0x44e   : > { %2837 = vmatmul.mubr.msk.bf16.vlgmr.msra.gmra.mrb[4].mxu1 %vm1083_vm3, %v4076_v51  ;;  %2843 = vmatmul.mubr.msk.bf16.vlgmr.msra.gmra.mrb[8].mxu0 %vm1083_vm3, %v4074_v50  ;;  %v1426_v10 = vpop.permute.xlu0 %1425  ;;  %v1382_v11 = vsel %vm1083_vm3, %v1377_v9, 0 }
 0x44f   : > { %2847 = vmatpush3.bf16.xpose.msra.mxu1 %v1284_v7  ;;  %2853 = vmatpush3.bf16.xpose.msra.mxu0 %v1333_v8  ;;  %v1431_v12 = vsel %vm1083_vm3, %v1426_v10, 0 }
 0x450   : > { %2848 = vmatprep.mubr.msk.bf16.mxu1 %vm3555_vm1, %v3554_v31  ;;  %2854 = vmatprep.mubr.msk.bf16.mxu0 %vm3555_vm1, %v3554_v31 }
 0x451   : > { %2858 = vmatprep.subr.bf16.mxu1 %v3554_v31  ;;  %2864 = vmatprep.subr.bf16.mxu0 %v3554_v31  ;;  %v1647_v13 = vpop.permute.xlu1 %1646 }
 0x452   : > { %v1598_v14 = vpop.permute.xlu0 %1597  ;;  %v1652_v15 = vsel %vm1602_vm4, %v1647_v13, 0 }
 0x453   : > { %v1604_v16 = vsel %vm1602_vm4, %v1598_v14, 0 }
 0x456   : > { %2849 = vmatmul.mubr.msk.bf16.vlgmr.msra.gmra.mrb[8].mxu1 %vm1083_vm3, %v4085_v59  ;;  %2855 = vmatmul.mubr.msk.bf16.vlgmr.msra.gmra.mrb[12].mxu0 %vm1083_vm3, %v4083_v58 }
 0x457   : > { %2859 = vmatpush3.bf16.xpose.msra.mxu1 %v1382_v11  ;;  %2865 = vmatpush3.bf16.xpose.msra.mxu0 %v1431_v12 }
 0x458   : > { %2860 = vmatprep.mubr.msk.bf16.mxu1 %vm3555_vm1, %v3554_v31  ;;  %2866 = vmatprep.mubr.msk.bf16.mxu0 %vm3555_vm1, %v3554_v31 }
 0x459   : > { %2870 = vmatprep.subr.bf16.mxu1 %v3554_v31  ;;  %2876 = vmatprep.subr.bf16.mxu0 %v3554_v31 }
 0x45e   : > { %2861 = vmatmul.mubr.msk.bf16.vlgmr.msra.gmra.mrb[12].mxu1 %vm1083_vm3, %v4093_v63  ;;  %2867 = vmatmul.mubr.msk.bf16.vlgmr.msra.gmra.mrb[16].mxu0 %vm1083_vm3, %v4096_v0 }
 0x45f   : > { %2871 = vmatpush3.bf16.msra.mxu1 %v1604_v16  ;;  %2877 = vmatpush3.bf16.msra.mxu0 %v1652_v15 }
 0x460   : > { %2872 = vmatprep.mubr.msk.bf16.mxu1 %vm3555_vm1, %v3554_v31  ;;  %2878 = vmatprep.mubr.msk.bf16.mxu0 %vm3555_vm1, %v3554_v31 }
 0x461   : > { %2882 = vmatprep.subr.bf16.mxu1 %v3554_v31  ;;  %2888 = vmatprep.subr.bf16.mxu0 %v3554_v31 }
 0x4ae   : > { %v1124_v17 = vpop.f32.mrb[0].mxu1 }
 0x4af   : > { %v1473_v19 = vmul.f32 0.35355338, %v1124_v17  ;;  %v2826_v20 = vpop.f32.mrb[1].mxu1 }
 0x4b0   : > { %v1127_v21 = vpop.f32.mrb[2].mxu1 }
 0x4b1   : > { %v2827_v22 = vpop.f32.mrb[3].mxu1  ;;  %v4150_v23 = vadd.f32 %v2724_v18, %v1473_v19 }
 0x4b2   : > { %v1173_v24 = vpop.f32.mrb[4].mxu0 }
 0x4b3   : > { %v1474_v26 = vmul.f32 0.35355338, %v1173_v24  ;;  %v2832_v27 = vpop.f32.mrb[5].mxu0  ;;  %v1501_v28 = vsel %vm1083_vm3, %v4150_v23, -inf }
 0x4b4   : > { %1502 = vmax.xlane.f32.xlu1 %v1501_v28  ;;  %v1176_v29 = vpop.f32.mrb[6].mxu0 }
 0x4b5   : > { %v2833_v30 = vpop.f32.mrb[7].mxu0  ;;  %v1494_v32 = vadd.f32 %v2725_v25, %v1474_v26 }
 0x4b7   : > { %v1504_v35 = vsel %vm1083_vm3, %v1494_v32, -inf }
 0x4b8   : > { %1505 = vmax.xlane.f32.xlu0 %v1504_v35 }
 0x521   : > { %v1222_v36 = vpop.f32.mrb[4].mxu1  ;;  %v1271_v37 = vpop.f32.mrb[8].mxu0 }
 0x522   : > { %v1475_v38 = vmul.f32 0.35355338, %v1222_v36  ;;  %v1476_v39 = vmul.f32 0.35355338, %v1271_v37  ;;  %v2838_v40 = vpop.f32.mrb[5].mxu1  ;;  %v2844_v41 = vpop.f32.mrb[9].mxu0 }
 0x523   : > { %v1225_v42 = vpop.f32.mrb[6].mxu1  ;;  %v1274_v43 = vpop.f32.mrb[10].mxu0 }
 0x524   : > { %v2839_v44 = vpop.f32.mrb[7].mxu1  ;;  %v2845_v45 = vpop.f32.mrb[11].mxu0  ;;  %v1495_v46 = vadd.f32 %v2724_v18, %v1475_v38  ;;  %v1496_v47 = vadd.f32 %v2725_v25, %v1476_v39 }
 0x526   : > { %v1507_v48 = vsel %vm1083_vm3, %v1495_v46, -inf  ;;  %v1510_v49 = vsel %vm1083_vm3, %v1496_v47, -inf }
 0x527   : > { %1508 = vmax.xlane.f32.xlu0 %v1507_v48  ;;  %1511 = vmax.xlane.f32.xlu1 %v1510_v49 }
 0x529   : > { %v1320_v52 = vpop.f32.mrb[8].mxu1  ;;  %v1369_v53 = vpop.f32.mrb[12].mxu0 }
 0x52a   : > { %v1477_v54 = vmul.f32 0.35355338, %v1320_v52  ;;  %v1478_v55 = vmul.f32 0.35355338, %v1369_v53  ;;  %v2850_v56 = vpop.f32.mrb[9].mxu1  ;;  %v2856_v57 = vpop.f32.mrb[13].mxu0 }
 0x52b   : > { %v1323_v60 = vpop.f32.mrb[10].mxu1  ;;  %v1372_v61 = vpop.f32.mrb[14].mxu0 }
 0x52c   : > { %v2851_v62 = vpop.f32.mrb[11].mxu1  ;;  %v2857_v1 = vpop.f32.mrb[15].mxu0  ;;  %v4157_v2 = vadd.f32 %v2724_v18, %v1477_v54  ;;  %v1498_v3 = vadd.f32 %v2725_v25, %v1478_v55 }
 0x52e   : > { %v1513_v4 = vsel %vm1083_vm3, %v4157_v2, -inf  ;;  %v1516_v5 = vsel %vm1083_vm3, %v1498_v3, -inf }
 0x52f   : > { %1514 = vmax.xlane.f32.xlu0 %v1513_v4  ;;  %1517 = vmax.xlane.f32.xlu1 %v1516_v5 }
 0x531   : > { %v1418_v6 = vpop.f32.mrb[12].mxu1  ;;  %v1467_v7 = vpop.f32.mrb[16].mxu0 }
 0x532   : > { %v1479_v8 = vmul.f32 0.35355338, %v1418_v6  ;;  %v1480_v9 = vmul.f32 0.35355338, %v1467_v7  ;;  %v2862_v10 = vpop.f32.mrb[13].mxu1  ;;  %v2868_v11 = vpop.f32.mrb[17].mxu0 }
 0x533   : > { %v1421_v12 = vpop.f32.mrb[14].mxu1  ;;  %v1470_v13 = vpop.f32.mrb[18].mxu0 }
 0x534   : > { %v2863_v14 = vpop.f32.mrb[15].mxu1  ;;  %v2869_v15 = vpop.f32.mrb[19].mxu0  ;;  %v1499_v16 = vadd.f32 %v2724_v18, %v1479_v8  ;;  %v1500_v17 = vadd.f32 %v2725_v25, %v1480_v9 }
 0x536   : > { %v1519_v19 = vsel %vm1083_vm3, %v1499_v16, -inf  ;;  %v1522_v20 = vsel %vm1083_vm3, %v1500_v17, -inf }
 0x537   : > { %1520 = vmax.xlane.f32.xlu0 %v1519_v19  ;;  %1523 = vmax.xlane.f32.xlu1 %v1522_v20 }
 0x541   : > { %v1503_v21 = vpop.xlane.xlu1 %1502 }
 0x542   : > { %v1525_v24 = vsub.f32 %v4150_v23, %v1503_v21 }
 0x544   : > { %v1533_v27 = vmul.f32 1.442695, %v1525_v24 }
 0x545   : > { %v1506_v22 = vpop.xlane.xlu0 %1505 }
 0x546   : > { %v1526_v26 = vsub.f32 %v1494_v32, %v1506_v22  ;;  %3133 = vpow2.f32 %v1533_v27 }
 0x548   : > { %1694 = vrot.lane.b32.xlu1 %v4076_v51, %s3560_s29  ;;  %v1535_v18 = vmul.f32 1.442695, %v1526_v26 }
 0x54a   : > { %3135 = vpow2.f32 %v1535_v18 }
 0x54d   : > { %1742 = vrot.lane.b32.xlu0 %v4074_v50, %s3560_s29 }
 0x550   : > { %v3134_v25 = vpop.eup %3133 }
 0x551   : > { %v1549_v29 = vsel %vm1083_vm3, %v3134_v25, 0.0 }
 0x554   : > { %v3136_v28 = vpop.eup %3135 }
 0x555   : > { %v1552_v30 = vsel %vm1083_vm3, %v3136_v28, 0.0 }
 0x56c   : > { %1550 = vadd.xlane.f32.xlu0 %v1549_v29  ;;  %1553 = vadd.xlane.f32.xlu1 %v1552_v30 }
 0x57d   : > { %1790 = vrot.lane.b32.xlu1 %v4085_v59, %s3560_s29 }
 0x5b4   : > { %v1509_v50 = vpop.xlane.xlu0 %1508  ;;  %v1512_v51 = vpop.xlane.xlu1 %1511 }
 0x5b5   : > { %v1527_v35 = vsub.f32 %v1495_v46, %v1509_v50  ;;  %v1528_v23 = vsub.f32 %v1496_v47, %v1512_v51 }
 0x5b7   : > { %v1537_v32 = vmul.f32 1.442695, %v1527_v35  ;;  %v1539_v36 = vmul.f32 1.442695, %v1528_v23 }
 0x5b9   : > { %3137 = vpow2.f32 %v1537_v32 }
 0x5ba   : > { %3139 = vpow2.f32 %v1539_v36 }
 0x5bc   : > { %v1518_v37 = vpop.xlane.xlu1 %1517  ;;  %v1515_v52 = vpop.xlane.xlu0 %1514 }
 0x5bd   : > { %v1530_v38 = vsub.f32 %v1498_v3, %v1518_v37  ;;  %v1529_v53 = vsub.f32 %v4157_v2, %v1515_v52 }
 0x5bf   : > { %v1543_v39 = vmul.f32 1.442695, %v1530_v38  ;;  %v1541_v55 = vmul.f32 1.442695, %v1529_v53 }
 0x5c1   : > { %3141 = vpow2.f32 %v1543_v39 }
 0x5c3   : > { %v4173_v40 = vpop.eup %3137 }
 0x5c4   : > { %v4175_v41 = vpop.eup %3139  ;;  %v1524_v42 = vpop.xlane.xlu1 %1523  ;;  %v1555_v59 = vsel %vm1083_vm3, %v4173_v40, 0.0 }
 0x5c5   : > { %v1532_v43 = vsub.f32 %v1500_v17, %v1524_v42  ;;  %1556 = vadd.xlane.f32.xlu0 %v1555_v59  ;;  %v1558_v44 = vsel %vm1083_vm3, %v4175_v41, 0.0  ;;  %v1521_v54 = vpop.xlane.xlu0 %1520 }
 0x5c6   : > { %1559 = vadd.xlane.f32.xlu1 %v1558_v44  ;;  %v1531_v56 = vsub.f32 %v1499_v16, %v1521_v54 }
 0x5c7   : > { %v1547_v45 = vmul.f32 1.442695, %v1532_v43 }
 0x5c8   : > { %v1545_v57 = vmul.f32 1.442695, %v1531_v56  ;;  %v1695_v61 = vpop.permute.xlu1 %1694 }
 0x5c9   : > { %3143 = vpow2.f32 %v1547_v45  ;;  %v1743_v60 = vpop.permute.xlu0 %1742  ;;  %v1700_v10 = vsel %vm1602_vm4, %v1695_v61, 0 }
 0x5ca   : > { %3145 = vpow2.f32 %v1541_v55  ;;  %v1748_v11 = vsel %vm1602_vm4, %v1743_v60, 0 }
 0x5cb   : > { %v4181_v46 = vpop.eup %3141  ;;  %3147 = vpow2.f32 %v1545_v57 }
 0x5cc   : > { %v1564_v47 = vsel %vm1083_vm3, %v4181_v46, 0.0 }
 0x5cd   : > { %1565 = vadd.xlane.f32.xlu1 %v1564_v47 }
 0x5d3   : > { %v4185_v48 = vpop.eup %3143 }
 0x5d4   : > { %v1570_v49 = vsel %vm1083_vm3, %v4185_v48, 0.0  ;;  %v4194_v62 = vpop.eup %3145 }
 0x5d5   : > { %1571 = vadd.xlane.f32.xlu1 %v1570_v49  ;;  %v4198_v4 = vpop.eup %3147 }
 0x5db   : > { %1838 = vrot.lane.b32.xlu0 %v4083_v58, %s3560_s29  ;;  %v1561_v58 = vsel %vm1083_vm3, %v4194_v62, 0.0 }
 0x5e6   : > { %1886 = vrot.lane.b32.xlu1 %v4093_v63, %s3560_s29  ;;  %v1567_v63 = vsel %vm1083_vm3, %v4198_v4, 0.0 }
 0x5f9   : > { %v1551_v1 = vpop.xlane.xlu0 %1550  ;;  %v1554_v3 = vpop.xlane.xlu1 %1553 }
 0x5fa   : > { %3149 = vrcp.f32 %v1551_v1  ;;  %1562 = vadd.xlane.f32.xlu0 %v1561_v58 }
 0x5fb   : > { %3151 = vrcp.f32 %v1554_v3 }
 0x5fd   : > { %v1791_v12 = vpop.permute.xlu1 %1790 }
 0x5fe   : > { %1568 = vadd.xlane.f32.xlu0 %v1567_v63  ;;  %v1796_v26 = vsel %vm1602_vm4, %v1791_v12, 0 }
 0x604   : > { %v3150_v2 = vpop.eup %3149 }
 0x605   : > { %v3152_v5 = vpop.eup %3151  ;;  %v1581_v6 = vmul.f32 %v3150_v2, %v3134_v25  ;;  %v3125_v2 = vld [vmem:[%s4020_s4] sm:$0xff]  }
 0x606   : > { %v1582_v7 = vmul.f32 %v3152_v5, %v3136_v28 }
 0x607   : > { %v1589_v8 = vpack.c.bf16 %v1581_v6, %v1581_v6 }
 0x608   : > { %v1590_v9 = vpack.c.bf16 %v1582_v7, %v1582_v7 }
 0x609   : > { %2873 = vmatmul.mubr.msk.bf16.vlgmr.msra.gmra.mrb[16].mxu1 %vm1083_vm3, %v1589_v8 }
 0x60a   : > { %2879 = vmatmul.mubr.msk.bf16.vlgmr.msra.gmra.mrb[20].mxu0 %vm1083_vm3, %v1590_v9  ;;  %2883 = vmatpush3.bf16.msra.mxu1 %v1700_v10  ;;  %v3126_v10 = vld [vmem:[%s4020_s4 + $0x8] sm:$0xff]   ;;  %s4458_s4 = scalar_lea.vmem [#allocation11], %s3987_s27 }
 0x60b   : > { %2889 = vmatpush3.bf16.msra.mxu0 %v1748_v11  ;;  %2884 = vmatprep.mubr.msk.bf16.mxu1 %vm3555_vm1, %v3554_v31 }
 0x60c   : > { %2890 = vmatprep.mubr.msk.bf16.mxu0 %vm3555_vm1, %v3554_v31  ;;  %2894 = vmatprep.subr.bf16.mxu1 %v3554_v31 }
 0x60d   : > { %2900 = vmatprep.subr.bf16.mxu0 %v3554_v31 }
 0x614   : > { %1934 = vrot.lane.b32.xlu0 %v4096_v0, %s3560_s29 }
 0x652   : > { %v1557_v13 = vpop.xlane.xlu0 %1556 }
 0x653   : > { %3153 = vrcp.f32 %v1557_v13  ;;  %v1560_v14 = vpop.xlane.xlu1 %1559 }
 0x654   : > { %3155 = vrcp.f32 %v1560_v14 }
 0x656   : > { %v1839_v21 = vpop.permute.xlu0 %1838 }
 0x657   : > { %v1844_v0 = vsel %vm1602_vm4, %v1839_v21, 0 }
 0x65a   : > { %v1566_v15 = vpop.xlane.xlu1 %1565 }
 0x65b   : > { %3157 = vrcp.f32 %v1566_v15 }
 0x65d   : > { %v3154_v16 = vpop.eup %3153 }
 0x65e   : > { %v3156_v17 = vpop.eup %3155  ;;  %v1583_v19 = vmul.f32 %v3154_v16, %v4173_v40 }
 0x65f   : > { %v1584_v20 = vmul.f32 %v3156_v17, %v4175_v41 }
 0x660   : > { %v1591_v22 = vpack.c.bf16 %v1583_v19, %v1583_v19 }
 0x661   : > { %v1592_v24 = vpack.c.bf16 %v1584_v20, %v1584_v20 }
 0x662   : > { %2885 = vmatmul.mubr.msk.bf16.vlgmr.msra.gmra.mrb[20].mxu1 %vm1083_vm3, %v1591_v22  ;;  %v1572_v28 = vpop.xlane.xlu1 %1571 }
 0x663   : > { %2891 = vmatmul.mubr.msk.bf16.vlgmr.msra.gmra.mrb[24].mxu0 %vm1083_vm3, %v1592_v24  ;;  %2895 = vmatpush3.bf16.msra.mxu1 %v1796_v26  ;;  %3159 = vrcp.f32 %v1572_v28 }
 0x664   : > { %2901 = vmatpush3.bf16.msra.mxu0 %v1844_v0  ;;  %2902 = vmatprep.mubr.msk.bf16.mxu0 %vm3555_vm1, %v3554_v31 }
 0x665   : > { %2912 = vmatprep.subr.bf16.mxu0 %v3554_v31  ;;  %2896 = vmatprep.mubr.msk.bf16.mxu1 %vm3555_vm1, %v3554_v31  ;;  %v3158_v27 = vpop.eup %3157 }
 0x666   : > { %2906 = vmatprep.subr.bf16.mxu1 %v3554_v31  ;;  %v1586_v18 = vmul.f32 %v3158_v27, %v4181_v46  ;;  %v1887_v38 = vpop.permute.xlu1 %1886 }
 0x667   : > { %v1892_v41 = vsel %vm1602_vm4, %v1887_v38, 0 }
 0x668   : > { %v1594_v25 = vpack.c.bf16 %v1586_v18, %v1586_v18 }
 0x66b   : > { %2903 = vmatmul.mubr.msk.bf16.vlgmr.msra.gmra.mrb[28].mxu0 %vm1083_vm3, %v1594_v25 }
 0x66c   : > { %2914 = vmatprep.mubr.msk.bf16.mxu0 %vm3555_vm1, %v3554_v31 }
 0x66d   : > { %v3160_v30 = vpop.eup %3159 }
 0x66e   : > { %v1588_v51 = vmul.f32 %v3160_v30, %v4185_v48 }
 0x670   : > { %v1596_v36 = vpack.c.bf16 %v1588_v51, %v1588_v51 }
 0x687   : > { %v1563_v29 = vpop.xlane.xlu0 %1562 }
 0x688   : > { %3161 = vrcp.f32 %v1563_v29 }
 0x68b   : > { %v1569_v50 = vpop.xlane.xlu0 %1568 }
 0x68c   : > { %3163 = vrcp.f32 %v1569_v50 }
 0x68f   : > { %v1935_v35 = vpop.permute.xlu0 %1934 }
 0x690   : > { %v1940_v23 = vsel %vm1602_vm4, %v1935_v35, 0 }
 0x691   : > { %2913 = vmatpush3.bf16.msra.mxu0 %v1940_v23 }
 0x692   : > { %v3162_v32 = vpop.eup %3161  ;;  %2926 = vmatprep.subr.bf16.mxu0 %v3554_v31 }
 0x693   : > { %v1585_v37 = vmul.f32 %v3162_v32, %v4194_v62 }
 0x694   : > { %2915 = vmatmul.mubr.msk.bf16.vlgmr.msra.gmra.mrb[32].mxu0 %vm1083_vm3, %v1596_v36  ;;  %v2734_v36 = vld [vmem:[%s4458_s4] ss:$0 sm:$0xff] }
 0x695   : > { %v1593_v39 = vpack.c.bf16 %v1585_v37, %v1585_v37  ;;  %2930 = vmatprep.mubr.msk.bf16.mxu0 %vm3555_vm1, %v3554_v31 }
 0x696   : > { %v3164_v40 = vpop.eup %3163 }
 0x697   : > { %2897 = vmatmul.mubr.msk.bf16.vlgmr.msra.gmra.mrb[24].mxu1 %vm1083_vm3, %v1593_v39  ;;  %v1587_v42 = vmul.f32 %v3164_v40, %v4198_v4 }
 0x698   : > { %2907 = vmatpush3.bf16.msra.mxu1 %v1892_v41  ;;  %2908 = vmatprep.mubr.msk.bf16.mxu1 %vm3555_vm1, %v3554_v31 }
 0x699   : > { %2918 = vmatprep.subr.bf16.mxu1 %v3554_v31  ;;  %v1595_v59 = vpack.c.bf16 %v1587_v42, %v1587_v42 }
 0x69f   : > { %2909 = vmatmul.mubr.msk.bf16.vlgmr.msra.gmra.mrb[28].mxu1 %vm1083_vm3, %v1595_v59 }
 0x6a0   : > { %2922 = vmatprep.mubr.msk.bf16.mxu1 %vm3555_vm1, %v3554_v31  ;;  %2919 = vmatpush3.bf16.msra.mxu1 %v3125_v2  ;;  %v2738_v2 = vld [vmem:[%s4459_s25] ss:$0 sm:$0xff] }
 0x6a1   : > { %2920 = vmatprep.subr.bf16.mxu1 %v3554_v31 }
 0x6a4   : > { %2921 = vmatpush3.bf16.msra.mxu1 %v3126_v10 }
 0x6a5   : > { %2934 = vmatprep.subr.bf16.mxu1 %v3554_v31 }
 0x6dc   : > { %v1640_v43 = vpop.f32.mrb[16].mxu1 }
 0x6dd   : > { %v1688_v44 = vpop.f32.mrb[20].mxu0  ;;  %v2874_v45 = vpop.f32.mrb[17].mxu1 }
 0x6de   : > { %v2880_v46 = vpop.f32.mrb[21].mxu0  ;;  %v1643_v47 = vpop.f32.mrb[18].mxu1 }
 0x6df   : > { %v1691_v48 = vpop.f32.mrb[22].mxu0  ;;  %v2875_v49 = vpop.f32.mrb[19].mxu1 }
 0x6e0   : > { %v2881_v52 = vpop.f32.mrb[23].mxu0 }
 0x735   : > { %v1736_v53 = vpop.f32.mrb[20].mxu1 }
 0x736   : > { %v1784_v54 = vpop.f32.mrb[24].mxu0  ;;  %v2886_v55 = vpop.f32.mrb[21].mxu1 }
 0x737   : > { %v3108_v56 = vpack.i.bf16 %v1784_v54, %v1736_v53  ;;  %v2892_v57 = vpop.f32.mrb[25].mxu0  ;;  %v1739_v60 = vpop.f32.mrb[22].mxu1 }
 0x738   : > { %v1787_v61 = vpop.f32.mrb[26].mxu0  ;;  %v2887_v62 = vpop.f32.mrb[23].mxu1  ;;  %v3128_v57 = vld [vmem:[%s4025_s22 + $0x8] sm:$0xff]  }
 0x739   : > { %3109 = vrot.lane.b32.xlu1 %v3108_v56, %s3561_s0  ;;  %v2893_v1 = vpop.f32.mrb[27].mxu0 }
 0x73e   : > { %v1880_v3 = vpop.f32.mrb[28].mxu0 }
 0x73f   : > { %v2904_v58 = vpop.f32.mrb[29].mxu0 }
 0x740   : > { %v1883_v4 = vpop.f32.mrb[30].mxu0 }
 0x741   : > { %v2905_v63 = vpop.f32.mrb[31].mxu0 }
 0x767   : > { %v1976_v5 = vpop.f32.mrb[32].mxu0 }
 0x768   : > { %v2916_v6 = vpop.f32.mrb[33].mxu0 }
 0x769   : > { %v1979_v7 = vpop.f32.mrb[34].mxu0 }
 0x76a   : > { %v1832_v8 = vpop.f32.mrb[24].mxu1  ;;  %v2917_v9 = vpop.f32.mrb[35].mxu0 }
 0x76b   : > { %v3113_v11 = vpack.i.bf16 %v1880_v3, %v1832_v8  ;;  %v2898_v12 = vpop.f32.mrb[25].mxu1 }
 0x76c   : > { %v1835_v13 = vpop.f32.mrb[26].mxu1 }
 0x76d   : > { %v2899_v14 = vpop.f32.mrb[27].mxu1  ;;  %3114 = vrot.lane.b32.xlu0 %v3113_v11, %s3562_s5  ;;  %v3129_v13 = vld [vmem:[%s4030_s18] sm:$0xff]  }
 0x76e   : > { %v3130_v14 = vld [vmem:[%s4030_s18 + $0x8] sm:$0xff]  }
 0x772   : > { %v1928_v15 = vpop.f32.mrb[28].mxu1 }
 0x773   : > { %v3118_v16 = vpack.i.bf16 %v1976_v5, %v1928_v15  ;;  %v2910_v17 = vpop.f32.mrb[29].mxu1  ;;  %v3131_v15 = vld [vmem:[%s4030_s18 + $0x10] sm:$0xff]  }
 0x774   : > { %v1931_v19 = vpop.f32.mrb[30].mxu1  ;;  %v2740_v17 = vld [vmem:[%s4461_s10] ss:$0 sm:$0xff] }
 0x775   : > { %v2911_v20 = vpop.f32.mrb[31].mxu1  ;;  %3119 = vrot.lane.b32.xlu1 %v3118_v16, %s3563_s16  ;;  %v3132_v16 = vld [vmem:[%s4030_s18 + $0x18] sm:$0xff]  }
 0x7ab   : > { %v3110_v21 = vpop.permute.xlu1 %3109 }
 0x7ac   : > { %v3112_v24 = vunpack.i.h.bf16 %v3110_v21  ;;  %v3111_v26 = vunpack.i.l.bf16 %v3110_v21 }
 0x7ae   : > { %v2011_v25 = vsel %vm1083_vm3, %v1688_v44, %v3112_v24  ;;  %v1994_v28 = vsel %vm1083_vm3, %v1640_v43, %v3111_v26 }
 0x7df   : > { %v3115_v22 = vpop.permute.xlu0 %3114 }
 0x7e0   : > { %v3117_v0 = vunpack.i.h.bf16 %v3115_v22  ;;  %v3116_v27 = vunpack.i.l.bf16 %v3115_v22 }
 0x7e2   : > { %v2012_v50 = vsel %vm1995_vm5, %v2011_v25, %v3117_v0  ;;  %v1996_v51 = vsel %vm1995_vm5, %v1994_v28, %v3116_v27 }
 0x7e7   : > { %v3120_v18 = vpop.permute.xlu1 %3119 }
 0x7e8   : > { %v3122_v29 = vunpack.i.h.bf16 %v3120_v18  ;;  %v3121_v30 = vunpack.i.l.bf16 %v3120_v18 }
 0x7ea   : > { %v2013_v35 = vsel %vm1997_vm6, %v2012_v50, %v3122_v29  ;;  %v1998_v23 = vsel %vm1997_vm6, %v1996_v51, %v3121_v30 }
 0x7eb   : > { %v2014_v32 = vpack.c.bf16 %v2013_v35, %v1998_v23 }
 0x7ed   : > { %2923 = vmatmul.mubr.msk.bf16.vlgmr.msra.gmra.mrb[32].mxu1 %vm1005_vm2, %v2014_v32 }
 0x7ee   : > { %2942 = vmatprep.mubr.msk.bf16.mxu1 %vm3555_vm1, %v3554_v31  ;;  %2935 = vmatpush3.bf16.msra.mxu1 %v3129_v13 }
 0x7ef   : > { %2936 = vmatprep.subr.bf16.mxu1 %v3554_v31 }
 0x7f2   : > { %2937 = vmatpush3.bf16.msra.mxu1 %v3130_v14 }
 0x7f3   : > { %2938 = vmatprep.subr.bf16.mxu1 %v3554_v31 }
 0x7f6   : > { %2939 = vmatpush3.bf16.msra.mxu1 %v3131_v15 }
 0x7f7   : > { %2940 = vmatprep.subr.bf16.mxu1 %v3554_v31 }
 0x7fa   : > { %2941 = vmatpush3.bf16.msra.mxu1 %v3132_v16  ;;  %v3177_v16 = vld [vmem:[%s4465_s12] sm:$0xff] (!%p2752_p4)  }
 0x8c0   : > { %v2075_v37 = vpop.f32.mrb[32].mxu1 }
 0x8c1   : > { %v2076_v38 = vadd.f32 %v2734_v36, %v2075_v37  ;;  %v2924_v39 = vpop.f32.mrb[33].mxu1 }
 0x8c2   : > { %v2078_v40 = vpop.f32.mrb[34].mxu1 }
 0x8c3   : > { %v2079_v41 = vadd.f32 %v2734_v36, %v2078_v40  ;;  %v2925_v42 = vpop.f32.mrb[35].mxu1  ;;  %v2082_v59 = vadd.f32 %v2076_v38, %v4057_v33 }
 0x8c4   : > { %v2744_v42 = vld [vmem:[%s801_s21] ss:$0 sm:$0xff] }
 0x8c5   : > { %v2086_v43 = vsel %vm1005_vm2, %v2082_v59, 0.0  ;;  %v2083_v44 = vadd.f32 %v2079_v41, %v4059_v34  ;;  %v3127_v34 = vld [vmem:[%s4025_s22] sm:$0xff]   ;;  %s4460_s22 = scalar_lea.vmem [#allocation14], %s3987_s27 }
 0x8c6   : > { %2087 = vadd.xlane.f32.xlu0 %v2086_v43  ;;  %2927 = vmatpush3.bf16.msra.mxu0 %v3127_v34  ;;  %v2739_v8 = vld [vmem:[%s4460_s22] ss:$0 sm:$0xff] }
 0x8c7   : > { %v2089_v45 = vsel %vm1005_vm2, %v2083_v44, 0.0  ;;  %2928 = vmatprep.subr.bf16.mxu0 %v3554_v31 }
 0x8c8   : > { %2090 = vadd.xlane.f32.xlu1 %v2089_v45 }
 0x8ca   : > { %2929 = vmatpush3.bf16.msra.mxu0 %v3128_v57 }
 0x953   : > { %v2088_v46 = vpop.xlane.xlu0 %2087 }
 0x954   : > { %v2093_v47 = vmul.f32 0.03125, %v2088_v46 }
 0x955   : > { %v2091_v48 = vpop.xlane.xlu1 %2090 }
 0x956   : > { %v2095_v49 = vsub.f32 %v2082_v59, %v2093_v47  ;;  %v2094_v52 = vmul.f32 0.03125, %v2091_v48 }
 0x958   : > { %v2096_v53 = vsub.f32 %v2083_v44, %v2094_v52  ;;  %v2097_v54 = vmul.f32 %v2095_v49, %v2095_v49 }
 0x95a   : > { %v2099_v55 = vsel %vm1005_vm2, %v2097_v54, 0.0  ;;  %v2098_v33 = vmul.f32 %v2096_v53, %v2096_v53 }
 0x95b   : > { %2100 = vadd.xlane.f32.xlu0 %v2099_v55 }
 0x95c   : > { %v2102_v56 = vsel %vm1005_vm2, %v2098_v33, 0.0 }
 0x95f   : > { %2103 = vadd.xlane.f32.xlu0 %v2102_v56 }
 0x9e8   : > { %v2101_v60 = vpop.xlane.xlu0 %2100 }
 0x9e9   : > { %v2105_v61 = vmul.f32 0.03125, %v2101_v60 }
 0x9eb   : > { %v2107_v62 = vadd.f32 1e-12, %v2105_v61 }
 0x9ec   : > { %v2104_v1 = vpop.xlane.xlu0 %2103 }
 0x9ed   : > { %3165 = vrsqrt.f32 %v2107_v62  ;;  %v2106_v3 = vmul.f32 0.03125, %v2104_v1 }
 0x9ef   : > { %v2108_v58 = vadd.f32 1e-12, %v2106_v3 }
 0x9f1   : > { %3167 = vrsqrt.f32 %v2108_v58 }
 0x9f7   : > { %v3166_v4 = vpop.eup %3165 }
 0x9f8   : > { %v2111_v63 = vmul.f32 %v3166_v4, %v2095_v49 }
 0x9fa   : > { %v2119_v6 = vmul.f32 %v2738_v2, %v2111_v63 }
 0x9fb   : > { %v3168_v5 = vpop.eup %3167 }
 0x9fc   : > { %v2112_v7 = vmul.f32 %v3168_v5, %v2096_v53  ;;  %v2127_v10 = vadd.f32 %v2739_v8, %v2119_v6 }
 0x9fe   : > { %v2120_v9 = vmul.f32 %v2738_v2, %v2112_v7  ;;  %v2750_v7 = vld [vmem:[%s918_s26] ss:$0 sm:$0xff] }
 0xa00   : > { %v2128_v11 = vadd.f32 %v2739_v8, %v2120_v9 }
 0xa02   : > { %v2129_v12 = vpack.c.bf16 %v2128_v11, %v2127_v10 }
 0xa04   : > { %2931 = vmatmul.mubr.msk.bf16.vlgmr.msra.gmra.mrb[36].mxu0 %vm1005_vm2, %v2129_v12 }
 0xad7   : > { %v2190_v19 = vpop.f32.mrb[36].mxu0 }
 0xad8   : > { %v2191_v20 = vadd.f32 %v2740_v17, %v2190_v19  ;;  %v2932_v21 = vpop.f32.mrb[37].mxu0  ;;  %v3178_v19 = vld [vmem:[%s4465_s12 + $0x8] sm:$0xff] (!%p2752_p4)  }
 0xad9   : > { %v2193_v22 = vpop.f32.mrb[38].mxu0  ;;  %v2753_v21 = vld [vmem:[%s4466_s19] ss:$0 sm:$0xff] (!%p2752_p4) }
 0xada   : > { %v2197_v24 = vmul.f32 %v2191_v20, %v2191_v20  ;;  %v2194_v26 = vadd.f32 %v2740_v17, %v2193_v22  ;;  %v2933_v0 = vpop.f32.mrb[39].mxu0  ;;  %v3564_v17 = vmov (!%p2752_p4), 0.0  }
 0xadb   : > { %2946 = vmatprep.subr.bf16.mxu0 (!%p2752_p4), %v3564_v17  ;;  %2950 = vmatprep.mubr.msk.bf16.mxu0 (!%p2752_p4), %vm3565_vm8, %v3564_v17 }
 0xadc   : > { %v2199_v27 = vmul.f32 %v2197_v24, %v2191_v20  ;;  %v2198_v18 = vmul.f32 %v2194_v26, %v2194_v26  ;;  %2947 = vmatpush3.bf16.msra.mxu0 (!%p2752_p4), %v3177_v16 }
 0xadd   : > { %2948 = vmatprep.subr.bf16.mxu0 (!%p2752_p4), %v3564_v17 }
 0xade   : > { %v2201_v25 = vmul.f32 0.044715, %v2199_v27  ;;  %v2200_v28 = vmul.f32 %v2198_v18, %v2194_v26 }
 0xae0   : > { %v2203_v29 = vadd.f32 %v2201_v25, %v2191_v20  ;;  %v2202_v30 = vmul.f32 0.044715, %v2200_v28  ;;  %2949 = vmatpush3.bf16.msra.mxu0 (!%p2752_p4), %v3178_v19 }
 0xae2   : > { %v2205_v50 = vmul.f32 0.7978846, %v2203_v29  ;;  %v2204_v31 = vadd.f32 %v2202_v30, %v2194_v26 }
 0xae4   : > { %3169 = vtanh.f32 %v2205_v50  ;;  %v2206_v51 = vmul.f32 0.7978846, %v2204_v31 }
 0xae6   : > { %3171 = vtanh.f32 %v2206_v51 }
 0xaee   : > { %v3170_v35 = vpop.eup %3169 }
 0xaef   : > { %v2209_v23 = vadd.f32 1.0, %v3170_v35 }
 0xaf0   : > { %v3172_v32 = vpop.eup %3171 }
 0xaf1   : > { %v2211_v36 = vmul.f32 0.5, %v2209_v23  ;;  %v2210_v37 = vadd.f32 1.0, %v3172_v32 }
 0xaf3   : > { %v2212_v38 = vmul.f32 0.5, %v2210_v37  ;;  %v2213_v39 = vmul.f32 %v2211_v36, %v2191_v20 }
 0xaf5   : > { %v2214_v40 = vmul.f32 %v2212_v38, %v2194_v26 }
 0xaf7   : > { %v2215_v41 = vpack.c.bf16 %v2214_v40, %v2213_v39 }
 0xaf9   : > { %2943 = vmatmul.mubr.msk.bf16.vlgmr.msra.gmra.mrb[36].mxu1 %vm2255_vm7, %v2215_v41 }
 0xbcc   : > { %v2293_v59 = vpop.f32.mrb[36].mxu1 }
 0xbcd   : > { %v2294_v43 = vadd.f32 %v2744_v42, %v2293_v59  ;;  %v2944_v44 = vpop.f32.mrb[37].mxu1 }
 0xbce   : > { %v2296_v45 = vpop.f32.mrb[38].mxu1 }
 0xbcf   : > { %v2297_v46 = vadd.f32 %v2744_v42, %v2296_v45  ;;  %v2945_v47 = vpop.f32.mrb[39].mxu1  ;;  %v2300_v48 = vadd.f32 %v2294_v43, %v2127_v10  ;;  %v2751_v10 = vld [vmem:[%s921_s2] ss:$0 sm:$0xff] }
 0xbd1   : > { %v2304_v49 = vsel %vm1005_vm2, %v2300_v48, 0.0  ;;  %v2301_v52 = vadd.f32 %v2297_v46, %v2128_v11 }
 0xbd2   : > { %2305 = vadd.xlane.f32.xlu1 %v2304_v49 }
 0xbd3   : > { %v2307_v53 = vsel %vm1005_vm2, %v2301_v52, 0.0 }
 0xbd4   : > { %2308 = vadd.xlane.f32.xlu0 %v2307_v53 }
 0xc5f   : > { %v2306_v54 = vpop.xlane.xlu1 %2305 }
 0xc60   : > { %v2310_v55 = vmul.f32 0.03125, %v2306_v54 }
 0xc61   : > { %v2309_v33 = vpop.xlane.xlu0 %2308 }
 0xc62   : > { %v2312_v56 = vsub.f32 %v2300_v48, %v2310_v55  ;;  %v2311_v34 = vmul.f32 0.03125, %v2309_v33 }
 0xc64   : > { %v2313_v57 = vsub.f32 %v2301_v52, %v2311_v34  ;;  %v2314_v60 = vmul.f32 %v2312_v56, %v2312_v56 }
 0xc66   : > { %v2316_v61 = vsel %vm1005_vm2, %v2314_v60, 0.0  ;;  %v2315_v62 = vmul.f32 %v2313_v57, %v2313_v57 }
 0xc67   : > { %2317 = vadd.xlane.f32.xlu1 %v2316_v61 }
 0xc68   : > { %v2319_v1 = vsel %vm1005_vm2, %v2315_v62, 0.0 }
 0xc69   : > { %2320 = vadd.xlane.f32.xlu0 %v2319_v1 }
 0xcf4   : > { %v2318_v3 = vpop.xlane.xlu1 %2317 }
 0xcf5   : > { %v2322_v58 = vmul.f32 0.03125, %v2318_v3 }
 0xcf6   : > { %v2321_v4 = vpop.xlane.xlu0 %2320 }
 0xcf7   : > { %v2324_v63 = vadd.f32 1e-12, %v2322_v58  ;;  %v2323_v2 = vmul.f32 0.03125, %v2321_v4 }
 0xcf9   : > { %3173 = vrsqrt.f32 %v2324_v63  ;;  %v2325_v5 = vadd.f32 1e-12, %v2323_v2 }
 0xcfb   : > { %3175 = vrsqrt.f32 %v2325_v5 }
 0xd03   : > { %v3174_v6 = vpop.eup %3173 }
 0xd04   : > { %v2328_v8 = vmul.f32 %v3174_v6, %v2312_v56 }
 0xd05   : > { %v3176_v9 = vpop.eup %3175 }
 0xd06   : > { %v2336_v11 = vmul.f32 %v2750_v7, %v2328_v8  ;;  %v2329_v12 = vmul.f32 %v3176_v9, %v2313_v57  ;;  %2351 = sbr.rel (%p2752_p4) target bundleno = 3559 (0xde7), region = 136 }
 0xd08   : > { %v2344_v13 = vadd.f32 %v2751_v10, %v2336_v11  ;;  %v2337_v14 = vmul.f32 %v2750_v7, %v2329_v12 }
 0xd0a   : > { %2346 = vst.msk [vmem:[#allocation2] sm:$0xff] %vm1005_vm2, %v2344_v13  ;;  %v2345_v15 = vadd.f32 %v2751_v10, %v2337_v14 }
 0xd0c   : > { %2347 = vst.msk [vmem:[#allocation2 + $0x8] sm:$0xff] %vm1005_vm2, %v2345_v15  ;;  %v2352_v20 = vpack.c.bf16 (!%p2752_p4), %v2345_v15, %v2344_v13 }
 0xd0e   : > { %2951 = vmatmul.mubr.msk.bf16.vlgmr.msra.gmra.mrb[0].mxu0 %vm1005_vm2, %v2352_v20 }
 0xde1   : > { %v2413_v22 = vpop.f32.mrb[0].mxu0 }
 0xde2   : > { %v2414_v24 = vadd.f32 %v2753_v21, %v2413_v22  ;;  %v2952_v26 = vpop.f32.mrb[1].mxu0 }
 0xde3   : > { %v2416_v0 = vpop.f32.mrb[2].mxu0 }
 0xde4   : > { %2420 = vst [vmem:[#allocation18] sm:$0xff] %v2414_v24  ;;  %v2417_v27 = vadd.f32 %v2753_v21, %v2416_v0  ;;  %v2953_v18 = vpop.f32.mrb[3].mxu0 }
 0xde6   : > { %2422 = vst [vmem:[#allocation18 + $0x8] sm:$0xff] %v2417_v27 }
 0xde7 PF: > { %p3018_p0 = scmp.eq.s32.totalorder %s3692_s1, 1  ;;  %s3566_s23 = smov [#allocation18]  }
 0xde8   : > { %s2432_s24 = sshll.u32 %s3566_s23, 4  ;;  %s2433_s24 = int_to_ptr.vmem [resolvable:$true] %s2432_s24 }
 0xde9   : > { %s3443_s29 = scalar_lea.vmem %s2433_s24, 256  ;;  %p3450_p8 = scmp.lt.s32.totalorder %s2433_s24, %s2433_s24 }
 0xdea   : > { %p3444_p5 = scmp.ne.s32.totalorder %s2433_s24, %s3443_s29  ;;  %p3451_p7 = scmp.lt.s32.totalorder %s3443_s29, %s3443_s29 }
 0xdec   : > { %p3445_p10 = pnand %p3444_p5, %p3018_p0  ;;  %p3452_p9 = por %p3451_p7, %p3450_p8 }
 0xdee   : > { %p3446_p2 = pneg %p3445_p10 }
 0xdf0   : > { %p3453_p3 = pnand %p3452_p9, %p3446_p2 }
 0xdf2   : > { %3456 = shalt.err (!%p3453_p3)
}
 0xdf3   : > { %s4467_s4 = sld [smem:[#allocation46_spill]] }
 0xdf9   : > { %s3457_s25 = scalar_lea.hbm %s4467_s4, 256 }
 0xdfa   : > { %p3458_p12 = scmp.ne.s32.totalorder %s4467_s4, %s3457_s25  ;;  %p3463_p1 = scmp.lt.u32.totalorder %s3457_s25, %s4467_s4 }
 0xdfc   : > { %p3459_p11 = pnand %p3458_p12, %p3018_p0 }
 0xdfe   : > { %p3460_p13 = pneg %p3459_p11 }
 0xe00   : > { %p3465_p6 = pnand %p3463_p1, %p3460_p13 }
 0xe02   : > { %3468 = shalt.err (!%p3465_p6)
}
 0xe03   : > { %s3567_s11 = smov 128  }
 0xe04   : > { %2979 = dma.vmem_to_hbm [thread:$0]  (%p3018_p0), %s2433_s24, 256, %s4467_s4, [#allocation5], %s3567_s11, %s3567_s11, %s3561_s0  }
 0xe05   : > { %3514 = dma.done.wait (%p3018_p0), [#allocation5], 256  }
 0xe06   : > { %3516 = vsyncadd (%p3018_p0), [#allocation5], 4294967040 }
 0xe07 PF: > { %s4468_s21 = sld [smem:[#allocation28_spill]]  ;;  %s4469_s3 = sld [smem:[#allocation25_spill]] }
 0xe08   : > { %s4470_s29 = sld [smem:[#allocation30_spill]]  ;;  %s4471_s30 = sld [smem:[#allocation27_spill]] }
 0xe09   : > { %s4472_s0 = sld [smem:[#allocation29_spill]]  ;;  %s4473_s27 = smov %s3523_s28 }
 0xe0d   : > { %s40_s19 = sadd.s32 1, %s4468_s21   ;;  %s4474_s28 = smov %s4469_s3 }
 0xe0e   : > { %p37_p4 = scmp.ge.s32.totalorder %s40_s19, 4  }
 0xe10   :  { %39 = sbr.rel (!%p37_p4) target bundleno = 28 (0x1c), region = 232 }
 0xe17   :  { %2448 = vsyncpa [#allocation4], 1 }
 0xe18   :  { %2450 = vsyncpa [#allocation4 + $0x1], 1 }
 0xe19   :  { %2451 = vsyncpa [#allocation7], 1 }
 0xe1a   :  { %2452 = vsyncpa [#allocation10], 1 }
 0xe1b   :  { %2454 = vsyncpa [#allocation10 + $0x1], 1 }
 0xe1c   :  { %2455 = vsyncpa [#allocation13], 1 }
 0xe1d   :  { %2457 = vsyncpa [#allocation13 + $0x1], 1 }
 0xe1e   :  { %2458 = vsyncpa [#allocation16], 1 }
 0xe1f   :  { %2460 = vsyncpa [#allocation16 + $0x1], 1 }
 0xe20   :  { %2461 = vsyncpa [#allocation5], 1 }
 0xe21   :  { %2463 = vsyncpa [#allocation5 + $0x1], 1 }

</bundles_post_ra>
